<compile_context>
chip_gen: v6e
topology: v6e:2x2x1
jax: 0.10.0
libtpu: 0.0.40
codegen_flags: <defaults>
</compile_context>

<pallas_src>
import jax
import jax.numpy as jnp
from jax.experimental import pallas as pl
from jax.experimental.pallas import tpu as pltpu


def _round_up(x, m):
    return (x + m - 1) // m * m


# ----------------------------------------------------------------------------
# Parameter init (mirrors layer_init: orthogonal(std=sqrt(2)), bias=0)
# ----------------------------------------------------------------------------
def orthogonal(key, shape, std):
    """Orthogonal init for a (out_features, in_features) weight, like torch."""
    rows, cols = shape
    n = max(rows, cols)
    a = jax.random.normal(key, (n, min(rows, cols)), dtype=jnp.float32)
    q, r = jnp.linalg.qr(a)
    d = jnp.sign(jnp.diagonal(r))          # sign fix -> deterministic
    q = q * d[None, :]
    if rows < cols:
        q = q.T
    return (std * q[:rows, :cols]).astype(jnp.float32)


def init_simple_critic_params(latent_size, key):
    k1, k2, k3 = jax.random.split(key, 3)
    std = jnp.sqrt(2.0)
    # PyTorch weight shapes: fc1 (1024, L), fc2 (512, 1024), fc3 (1, 512)
    w1_pt = orthogonal(k1, (1024, latent_size), std)
    w2_pt = orthogonal(k2, (512, 1024), std)
    w3_pt = orthogonal(k3, (1, 512), std)

    # Kernel layout: (in, out), unpadded K; bf16 matmul weights (f32 accumulate
    # in-kernel). w3 kept as a tiny f32 row for the VPU/XLU reduction.
    return dict(
        w1=w1_pt.T.astype(jnp.bfloat16),            # (L, 1024) bf16
        b1=jnp.zeros((1, 1024), jnp.float32),
        w2=w2_pt.T.astype(jnp.bfloat16),            # (1024, 512) bf16
        b2=jnp.zeros((1, 512), jnp.float32),
        w3=w3_pt,                                   # (1, 512) f32 row
        b3=jnp.zeros((1, 1), jnp.float32),
    )


# ----------------------------------------------------------------------------
# Pallas kernel: fused fc1 -> ReLU -> fc2 -> ReLU -> (row-reduction fc3)
# ----------------------------------------------------------------------------
def _critic_kernel(x_ref, w1_ref, b1_ref, w2_ref, b2_ref, w3_ref, b3_ref, o_ref):
    x = x_ref[...].astype(jnp.bfloat16)                         # (TB, L)

    h1 = jnp.dot(x, w1_ref[...],
                 preferred_element_type=jnp.float32) + b1_ref[...]
    h1 = jnp.maximum(h1, 0.0)                                   # (TB, 1024) f32

    h2 = jnp.dot(h1.astype(jnp.bfloat16), w2_ref[...],
                 preferred_element_type=jnp.float32) + b2_ref[...]
    h2 = jnp.maximum(h2, 0.0)                                   # (TB, 512) f32

    # fc3 (N=1) as a VPU multiply + cross-lane XLU reduce instead of a
    # lane-sparse MXU matmul; emit a lane-dense (1, TB) row (unmasked stores).
    col = jnp.sum(h2 * w3_ref[...], axis=-1, keepdims=True) + b3_ref[...]
    o_ref[...] = col.T.astype(o_ref.dtype)                      # (1, TB)


def _pick_batch_tile(B):
    """Batch tile: big enough to amortize the ~0.35us per-grid-step overhead,
    small enough that grid_b >= 2 for larger batches (v7x 2-TC sharding).
    Tiles > 8 and multi-step tiles are multiples of 128 so the lane-dense
    (1, tb) output block stays legal."""
    if B <= 256:
        return _round_up(max(B, 1), 8)   # single tile, no batch padding
    if B < 1024:
        return 256                       # grid_b >= 2, modest padding at worst
    return 512


@jax.jit
def simple_critic_forward(x, params):
    """x: (B, latent_size) float32 -> value: (B, 1) float32."""
    B, L = x.shape
    w1, b1 = params["w1"], params["b1"]
    w2, b2 = params["w2"], params["b2"]
    w3, b3 = params["w3"], params["b3"]

    tb = _pick_batch_tile(B)
    grid_b = pl.cdiv(B, tb)
    b_pad = grid_b * tb

    # Only batch padding (cheap, and only when B doesn't divide the tile);
    # the latent/K axis is never padded or copied.
    xp = x if b_pad == B else jnp.pad(x, ((0, b_pad - B), (0, 0)))

    out = pl.pallas_call(
        _critic_kernel,
        out_shape=jax.ShapeDtypeStruct((1, b_pad), jnp.float32),
        grid=(grid_b,),
        in_specs=[
            pl.BlockSpec((tb, L), lambda i: (i, 0)),       # x tiles (pipelined)
            pl.BlockSpec(w1.shape, lambda i: (0, 0)),      # weights: VMEM-resident
            pl.BlockSpec(b1.shape, lambda i: (0, 0)),
            pl.BlockSpec(w2.shape, lambda i: (0, 0)),
            pl.BlockSpec(b2.shape, lambda i: (0, 0)),
            pl.BlockSpec(w3.shape, lambda i: (0, 0)),
            pl.BlockSpec(b3.shape, lambda i: (0, 0)),
        ],
        out_specs=pl.BlockSpec((1, tb), lambda i: (0, i)),  # lane-dense row slab
        compiler_params=pltpu.CompilerParams(
            dimension_semantics=("parallel",),   # shard batch across TCs (v7x)
            vmem_limit_bytes=32 << 20,           # covers tb=512 working set
        ),
    )(xp, w1, b1, w2, b2, w3, b3)
    return out[0, :B].reshape(B, 1)


# ----------------------------------------------------------------------------
# References.
#  - simple_critic_ref_bf16: same precision policy as the kernel (bf16 matmul
#    inputs, f32 accumulation) -> only accumulation-order differences remain.
#  - simple_critic_ref_f32: pure f32, matches the PyTorch module's numerics;
#    used to bound the bf16 weight-quantization error.
# ----------------------------------------------------------------------------
def simple_critic_ref_bf16(x, params):
    h1 = jnp.maximum(
        jnp.dot(x.astype(jnp.bfloat16), params["w1"],
                preferred_element_type=jnp.float32) + params["b1"], 0.0)
    h2 = jnp.maximum(
        jnp.dot(h1.astype(jnp.bfloat16), params["w2"],
                preferred_element_type=jnp.float32) + params["b2"], 0.0)
    return jnp.sum(h2 * params["w3"], axis=-1, keepdims=True) + params["b3"]


def simple_critic_ref_f32(x, params):
    w1 = params["w1"].astype(jnp.float32)
    w2 = params["w2"].astype(jnp.float32)
    h1 = jnp.maximum(jnp.dot(x, w1) + params["b1"], 0.0)
    h2 = jnp.maximum(jnp.dot(h1, w2) + params["b2"], 0.0)
    return jnp.dot(h2, params["w3"].T) + params["b3"]


if __name__ == "__main__":
    latent_size = 64
    batch = 8

    key = jax.random.PRNGKey(0)
    k_param, k_x = jax.random.split(key)

    params = init_simple_critic_params(latent_size, k_param)
    x = jax.random.normal(k_x, (batch, latent_size), dtype=jnp.float32)

    out = simple_critic_forward(x, params)
    out = jax.block_until_ready(out)
    assert out.shape == (batch, 1), out.shape

    # Same-precision-policy reference: only accumulation-order differences.
    ref_bf16 = simple_critic_ref_bf16(x, params)
    assert jnp.allclose(out, ref_bf16, atol=5e-3, rtol=1e-3), (out, ref_bf16)

    # Pure-f32 (PyTorch-equivalent) reference: bounds bf16 quantization error.
    ref_f32 = simple_critic_ref_f32(x, params)
    assert jnp.allclose(out, ref_f32, atol=5e-2, rtol=2e-2), (out, ref_f32)

    print("KERNEL_OK")
</pallas_src>

<mosaic_0001>
module attributes {stable_mosaic.version = 11 : i64} {
  func.func @_critic_kernel(%arg0: i32, %arg1: memref<8x64xf32, #tpu.memory_space<vmem>>, %arg2: memref<64x1024xbf16, #tpu.memory_space<vmem>>, %arg3: memref<1x1024xf32, #tpu.memory_space<vmem>>, %arg4: memref<1024x512xbf16, #tpu.memory_space<vmem>>, %arg5: memref<1x512xf32, #tpu.memory_space<vmem>>, %arg6: memref<1x512xf32, #tpu.memory_space<vmem>>, %arg7: memref<1x1xf32, #tpu.memory_space<vmem>>, %arg8: memref<1x8xf32, #tpu.memory_space<vmem>>) attributes {dimension_semantics = [#tpu.dimension_semantics<parallel>], iteration_bounds = array<i64: 1>, scalar_prefetch = 0 : i64, scratch_operands = 0 : i64, tpu.core_type = #tpu.core_type<tc>, window_params = [{transform_indices = @transform_0, window_bounds = array<i64: 8, 64>}, {pipeline_mode = #tpu.pipeline_mode<synchronous>, transform_indices = @transform_1, window_bounds = array<i64: 64, 1024>}, {pipeline_mode = #tpu.pipeline_mode<synchronous>, transform_indices = @transform_2, window_bounds = array<i64: 1, 1024>}, {pipeline_mode = #tpu.pipeline_mode<synchronous>, transform_indices = @transform_3, window_bounds = array<i64: 1024, 512>}, {pipeline_mode = #tpu.pipeline_mode<synchronous>, transform_indices = @transform_4, window_bounds = array<i64: 1, 512>}, {pipeline_mode = #tpu.pipeline_mode<synchronous>, transform_indices = @transform_5, window_bounds = array<i64: 1, 512>}, {pipeline_mode = #tpu.pipeline_mode<synchronous>, transform_indices = @transform_6, window_bounds = array<i64: 1, 1>}, {transform_indices = @transform_7, window_bounds = array<i64: 1, 8>}]} {
    %c0 = arith.constant 0 : index
    %c0_0 = arith.constant 0 : index
    %0 = vector.load %arg1[%c0, %c0_0] : memref<8x64xf32, #tpu.memory_space<vmem>>, vector<8x64xf32>
    %1 = arith.truncf %0 : vector<8x64xf32> to vector<8x64xbf16>
    %c0_1 = arith.constant 0 : index
    %c0_2 = arith.constant 0 : index
    %2 = vector.load %arg2[%c0_1, %c0_2] : memref<64x1024xbf16, #tpu.memory_space<vmem>>, vector<64x1024xbf16>
    %cst = arith.constant dense<0.000000e+00> : vector<8x1024xf32>
    %3 = tpu.matmul %1, %2, %cst {dimension_numbers = #tpu.dot_dimension_numbers<[1], [0], [0], [1], [0, 0, 1, 1], [], []>} : vector<8x64xbf16>, vector<64x1024xbf16>, vector<8x1024xf32> -> vector<8x1024xf32>
    %c0_3 = arith.constant 0 : index
    %c0_4 = arith.constant 0 : index
    %4 = vector.load %arg3[%c0_3, %c0_4] : memref<1x1024xf32, #tpu.memory_space<vmem>>, vector<1x1024xf32>
    %5 = vector.broadcast %4 : vector<1x1024xf32> to vector<8x1024xf32>
    %6 = arith.addf %3, %5 : vector<8x1024xf32>
    %cst_5 = arith.constant 0.000000e+00 : f32
    %7 = vector.broadcast %cst_5 : f32 to vector<8x1024xf32>
    %8 = arith.maximumf %6, %7 : vector<8x1024xf32>
    %9 = arith.truncf %8 : vector<8x1024xf32> to vector<8x1024xbf16>
    %c0_6 = arith.constant 0 : index
    %c0_7 = arith.constant 0 : index
    %10 = vector.load %arg4[%c0_6, %c0_7] : memref<1024x512xbf16, #tpu.memory_space<vmem>>, vector<1024x512xbf16>
    %cst_8 = arith.constant dense<0.000000e+00> : vector<8x512xf32>
    %11 = tpu.matmul %9, %10, %cst_8 {dimension_numbers = #tpu.dot_dimension_numbers<[1], [0], [0], [1], [0, 0, 1, 1], [], []>} : vector<8x1024xbf16>, vector<1024x512xbf16>, vector<8x512xf32> -> vector<8x512xf32>
    %c0_9 = arith.constant 0 : index
    %c0_10 = arith.constant 0 : index
    %12 = vector.load %arg5[%c0_9, %c0_10] : memref<1x512xf32, #tpu.memory_space<vmem>>, vector<1x512xf32>
    %13 = vector.broadcast %12 : vector<1x512xf32> to vector<8x512xf32>
    %14 = arith.addf %11, %13 : vector<8x512xf32>
    %cst_11 = arith.constant 0.000000e+00 : f32
    %15 = vector.broadcast %cst_11 : f32 to vector<8x512xf32>
    %16 = arith.maximumf %14, %15 : vector<8x512xf32>
    %c0_12 = arith.constant 0 : index
    %c0_13 = arith.constant 0 : index
    %17 = vector.load %arg6[%c0_12, %c0_13] : memref<1x512xf32, #tpu.memory_space<vmem>>, vector<1x512xf32>
    %18 = vector.broadcast %17 : vector<1x512xf32> to vector<8x512xf32>
    %19 = arith.mulf %16, %18 : vector<8x512xf32>
    %cst_14 = arith.constant dense<0.000000e+00> : vector<8xf32>
    %20 = vector.multi_reduction <add>, %19, %cst_14 [1] : vector<8x512xf32> to vector<8xf32>
    %21 = vector.shape_cast %20 : vector<8xf32> to vector<8x1xf32>
    %c0_15 = arith.constant 0 : index
    %c0_16 = arith.constant 0 : index
    %22 = vector.load %arg7[%c0_15, %c0_16] : memref<1x1xf32, #tpu.memory_space<vmem>>, vector<1x1xf32>
    %23 = vector.broadcast %22 : vector<1x1xf32> to vector<8x1xf32>
    %24 = arith.addf %21, %23 : vector<8x1xf32>
    %25 = tpu.transpose %24, [1, 0] : vector<8x1xf32> -> vector<1x8xf32>
    %c0_17 = arith.constant 0 : index
    %c0_18 = arith.constant 0 : index
    %26 = vector.load %arg8[%c0_17, %c0_18] : memref<1x8xf32, #tpu.memory_space<vmem>>, vector<1x8xf32>
    tpu.vector_store %arg8[%c0_17, %c0_18], %25 {strides = array<i32>} : memref<1x8xf32, #tpu.memory_space<vmem>>, vector<1x8xf32>,
    return
  }
  func.func @transform_0(%arg0: i32) -> (i32, i32) {
    %c0_i32 = arith.constant 0 : i32
    %c0_i32_0 = arith.constant 0 : i32
    return %arg0, %c0_i32 : i32, i32
  }
  func.func @transform_1(%arg0: i32) -> (i32, i32) {
    %c0_i32 = arith.constant 0 : i32
    %c0_i32_0 = arith.constant 0 : i32
    %c0_i32_1 = arith.constant 0 : i32
    return %c0_i32, %c0_i32_0 : i32, i32
  }
  func.func @transform_2(%arg0: i32) -> (i32, i32) {
    %c0_i32 = arith.constant 0 : i32
    %c0_i32_0 = arith.constant 0 : i32
    %c0_i32_1 = arith.constant 0 : i32
    return %c0_i32, %c0_i32_0 : i32, i32
  }
  func.func @transform_3(%arg0: i32) -> (i32, i32) {
    %c0_i32 = arith.constant 0 : i32
    %c0_i32_0 = arith.constant 0 : i32
    %c0_i32_1 = arith.constant 0 : i32
    return %c0_i32, %c0_i32_0 : i32, i32
  }
  func.func @transform_4(%arg0: i32) -> (i32, i32) {
    %c0_i32 = arith.constant 0 : i32
    %c0_i32_0 = arith.constant 0 : i32
    %c0_i32_1 = arith.constant 0 : i32
    return %c0_i32, %c0_i32_0 : i32, i32
  }
  func.func @transform_5(%arg0: i32) -> (i32, i32) {
    %c0_i32 = arith.constant 0 : i32
    %c0_i32_0 = arith.constant 0 : i32
    %c0_i32_1 = arith.constant 0 : i32
    return %c0_i32, %c0_i32_0 : i32, i32
  }
  func.func @transform_6(%arg0: i32) -> (i32, i32) {
    %c0_i32 = arith.constant 0 : i32
    %c0_i32_0 = arith.constant 0 : i32
    %c0_i32_1 = arith.constant 0 : i32
    return %c0_i32, %c0_i32_0 : i32, i32
  }
  func.func @transform_7(%arg0: i32) -> (i32, i32) {
    %c0_i32 = arith.constant 0 : i32
    %c0_i32_0 = arith.constant 0 : i32
    return %c0_i32, %arg0 : i32, i32
  }
}

</mosaic_0001>

<bundles_post_ra>
// kernel: simple_critic_forward.1
= control target key start
LH: loop header
LB: loop body
LE: loop exit
PB: predicated region body
PF: predicated region fallthrough
CT: control target
= control target key end

     0   :  { %s3437_s0 = inlined_call_operand.hbm [shape: f32[8,64], index: 0, kind: input, shape index: {}]   ;;  %s3438_s1 = inlined_call_operand.hbm [shape: bf16[64,1024], index: 1, kind: input, shape index: {}]   ;;  %s3439_s2 = inlined_call_operand.hbm [shape: f32[1,1024], index: 2, kind: input, shape index: {}]   ;;  %s3440_s3 = inlined_call_operand.hbm [shape: bf16[1024,512], index: 3, kind: input, shape index: {}]   ;;  %s3441_s4 = inlined_call_operand.vmem [shape: f32[1,512], index: 4, kind: input, shape index: {}]   ;;  %s3442_s5 = inlined_call_operand.vmem [shape: f32[1,512], index: 5, kind: input, shape index: {}]   ;;  %s3443_s6 = inlined_call_operand.<no memory space> [shape: f32[1,1], index: 6, kind: input, shape index: {}]   ;;  %s3444_s7 = inlined_call_operand.hbm [shape: f32[1,8], index: 7, kind: output, shape index: {}]  }
   0x1   :  { %v12_v0 = vstv %s3443_s6 }
   0x2   :  { %13 = vst [vmem:[#allocation2] sm:$0x1] %v12_v0 }
   0x3   :  { %14 = vsyncpa [#allocation4], 0 }
   0x4   :  { %15 = vsyncpa [#allocation7], 0 }
   0x5   :  { %16 = vsyncpa [#allocation10], 0 }
   0x6   :  { %17 = vsyncpa [#allocation5], 0  ;;  %s3277_s26 = smov [#allocation6]  }
   0x7   :  { %s33_s27 = sshll.u32 %s3277_s26, 4  ;;  %s34_s27 = int_to_ptr.vmem [resolvable:$true] %s33_s27 }
   0x8   :  { %s3177_s28 = scalar_lea.vmem %s34_s27, 4096  ;;  %p3182_p1 = scmp.lt.s32.totalorder %s34_s27, %s34_s27 }
   0x9   :  { %p3178_p0 = scmp.ne.s32.totalorder %s34_s27, %s3177_s28  ;;  %p3183_p2 = scmp.lt.s32.totalorder %s3177_s28, %s3177_s28 }
   0xb   :  { %p3184_p3 = por %p3183_p2, %p3182_p1 }
   0xd   :  { %p3185_p4 = pnand %p3184_p3, %p3178_p0 }
   0xf   :  { %3188 = shalt.err (!%p3185_p4)
}
  0x10   :  { %s3278_s29 = smov 512   ;;  %s3279_s30 = smov 32  }
  0x11   :  { %39 = dma.hbm_to_vmem [thread:$0]  %s3438_s1, 4096, %s34_s27, [#allocation7], %s3278_s29, %s3278_s29, %s3279_s30  }
  0x12   :  { %s3280_s6 = smov [#allocation3]   ;;  %s3281_s11 = smov [#allocation8]  }
  0x13   :  { %s24_s10 = sshll.u32 %s3280_s6, 4  ;;  %s46_s12 = sshll.u32 %s3281_s11, 4  ;;  %s25_s10 = int_to_ptr.vmem [resolvable:$true] %s24_s10  ;;  %s47_s12 = int_to_ptr.vmem [resolvable:$true] %s46_s12 }
  0x14   :  { %s3197_s13 = scalar_lea.vmem %s25_s10, 128  ;;  %p3202_p6 = scmp.lt.s32.totalorder %s25_s10, %s25_s10 }
  0x15   :  { %p3198_p5 = scmp.ne.s32.totalorder %s25_s10, %s3197_s13  ;;  %p3203_p7 = scmp.lt.s32.totalorder %s3197_s13, %s3197_s13 }
  0x17   :  { %p3204_p8 = por %p3203_p7, %p3202_p6 }
  0x19   :  { %p3205_p9 = pnand %p3204_p8, %p3198_p5 }
  0x1b   :  { %3208 = shalt.err (!%p3205_p9)
}
  0x1c   :  { %27 = dma.hbm_to_vmem [thread:$0]  %s3437_s0, 128, %s25_s10, [#allocation4]  }
  0x1d   :  { %s3217_s16 = scalar_lea.vmem %s47_s12, 128  ;;  %p3222_p11 = scmp.lt.s32.totalorder %s47_s12, %s47_s12 }
  0x1e   :  { %p3218_p10 = scmp.ne.s32.totalorder %s47_s12, %s3217_s16  ;;  %p3223_p12 = scmp.lt.s32.totalorder %s3217_s16, %s3217_s16 }
  0x20   :  { %p3224_p13 = por %p3223_p12, %p3222_p11 }
  0x22   :  { %p3225_p0 = pnand %p3224_p13, %p3218_p10 }
  0x24   :  { %3228 = shalt.err (!%p3225_p0)
}
  0x25   :  { %49 = dma.hbm_to_vmem [thread:$0]  %s3439_s2, 128, %s47_s12, [#allocation7]  }
  0x26   :  { %s3282_s18 = smov [#allocation9]  }
  0x27   :  { %s55_s19 = sshll.u32 %s3282_s18, 4  ;;  %s56_s19 = int_to_ptr.vmem [resolvable:$true] %s55_s19 }
  0x28   :  { %s3237_s20 = scalar_lea.vmem %s56_s19, 32768  ;;  %p3242_p2 = scmp.lt.s32.totalorder %s56_s19, %s56_s19 }
  0x29   :  { %p3238_p1 = scmp.ne.s32.totalorder %s56_s19, %s3237_s20  ;;  %p3243_p3 = scmp.lt.s32.totalorder %s3237_s20, %s3237_s20 }
  0x2b   :  { %p3244_p4 = por %p3243_p3, %p3242_p2 }
  0x2d   :  { %p3245_p5 = pnand %p3244_p4, %p3238_p1 }
  0x2f   :  { %3248 = shalt.err (!%p3245_p5)
}
  0x30   :  { %s3283_s0 = smov 256   ;;  %s3284_s21 = smov 16  }
  0x31   :  { %61 = dma.hbm_to_vmem [thread:$0]  %s3440_s3, 32768, %s56_s19, [#allocation10], %s3283_s0, %s3283_s0, %s3284_s21  }
  0x32   :  { %3269 = dma.done.wait [#allocation4], 128  }
  0x33   :  { %3270 = vsyncadd [#allocation4], 4294967168 }
  0x34   :  { %3271 = dma.done.wait [#allocation7], 4224  }
  0x35   :  { %3272 = vsyncadd [#allocation7], 4294963072 }
  0x36   :  { %3273 = dma.done.wait [#allocation10], 32768  }
  0x37   :  { %3274 = vsyncadd [#allocation10], 4294934528  ;;  %v3285_v1 = vmov 0   ;;  %v107_v2 = vld [vmem:[#allocation6 + $0xc0] sm:$0xff]  ;;  %v108_v4 = vld [vmem:[#allocation6 + $0xc8] sm:$0xff]  ;;  %vm317_vm0 = vcmask 523264  }
  0x38   :  { %353 = vmatprep.mubr.bf16.mxu0 %v3285_v1  ;;  %394 = vmatprep.mubr.bf16.mxu1 %v3285_v1  ;;  %v111_v3 = vld [vmem:[#allocation6 + $0xe0] sm:$0xff]  ;;  %v112_v6 = vld [vmem:[#allocation6 + $0xe8] sm:$0xff]  ;;  %v109_v32 = vld [vmem:[#allocation6 + $0xd0] sm:$0xff]  ;;  %vm2462_vm1 = vcmask 57344  }
  0x39   :  { %v2506_v5 = vcombine.high %v107_v2, %v111_v3  ;;  %v2505_v7 = vcombine.low %v107_v2, %v111_v3  ;;  %v99_v8 = vld [vmem:[#allocation6 + $0x80] sm:$0xff]  ;;  %v2508_v10 = vcombine.high %v108_v4, %v112_v6  ;;  %v2507_v11 = vcombine.low %v108_v4, %v112_v6  ;;  %v100_v13 = vld [vmem:[#allocation6 + $0x88] sm:$0xff]  ;;  %v113_v33 = vld [vmem:[#allocation6 + $0xf0] sm:$0xff] }
  0x3a   :  { %v103_v9 = vld [vmem:[#allocation6 + $0xa0] sm:$0xff]  ;;  %v104_v14 = vld [vmem:[#allocation6 + $0xa8] sm:$0xff]  ;;  %v110_v34 = vld [vmem:[#allocation6 + $0xd8] sm:$0xff]  ;;  %v2510_v39 = vcombine.high %v109_v32, %v113_v33  ;;  %v2509_v46 = vcombine.low %v109_v32, %v113_v33 }
  0x3b   :  { %v2498_v12 = vcombine.high %v99_v8, %v103_v9  ;;  %v91_v15 = vld [vmem:[#allocation6 + $0x40] sm:$0xff]  ;;  %329 = vmatprep.subr.bf16.mxu0 %v2506_v5  ;;  %v2500_v16 = vcombine.high %v100_v13, %v104_v14  ;;  %v92_v18 = vld [vmem:[#allocation6 + $0x48] sm:$0xff]  ;;  %370 = vmatprep.subr.bf16.mxu1 %v2508_v10  ;;  %v2497_v20 = vcombine.low %v99_v8, %v103_v9  ;;  %v114_v35 = vld [vmem:[#allocation6 + $0xf8] sm:$0xff] }
  0x3c   :  { %v95_v17 = vld [vmem:[#allocation6 + $0x60] sm:$0xff]  ;;  %v96_v19 = vld [vmem:[#allocation6 + $0x68] sm:$0xff]  ;;  %330 = vmatpush1.bf16.msra.mxu0 %v2505_v7  ;;  %371 = vmatpush1.bf16.msra.mxu1 %v2507_v11  ;;  %v2499_v21 = vcombine.low %v100_v13, %v104_v14  ;;  %v81_v37 = vld [vmem:[#allocation3] sm:$0xff]  ;;  %v2512_v41 = vcombine.high %v110_v34, %v114_v35  ;;  %v2511_v47 = vcombine.low %v110_v34, %v114_v35 }
  0x3d   :  { %331 = vmatprep.subr.bf16.mxu0 %v2498_v12  ;;  %v2490_v22 = vcombine.high %v91_v15, %v95_v17  ;;  %372 = vmatprep.subr.bf16.mxu1 %v2500_v16  ;;  %v2492_v23 = vcombine.high %v92_v18, %v96_v19  ;;  %v83_v24 = vld [vmem:[#allocation6] sm:$0xff]  ;;  %v84_v26 = vld [vmem:[#allocation6 + $0x8] sm:$0xff]  ;;  %v2489_v28 = vcombine.low %v91_v15, %v95_v17  ;;  %v101_v40 = vld [vmem:[#allocation6 + $0x90] sm:$0xff] }
  0x3e   :  { %v87_v25 = vld [vmem:[#allocation6 + $0x20] sm:$0xff]  ;;  %v88_v27 = vld [vmem:[#allocation6 + $0x28] sm:$0xff]  ;;  %v2491_v29 = vcombine.low %v92_v18, %v96_v19  ;;  %v105_v42 = vld [vmem:[#allocation6 + $0xb0] sm:$0xff]  ;;  %v82_v44 = vpack.c.bf16 %v81_v37, %v81_v37 }
  0x3f   :  { %v2482_v30 = vcombine.high %v83_v24, %v87_v25  ;;  %v2484_v31 = vcombine.high %v84_v26, %v88_v27  ;;  %v2481_v36 = vcombine.low %v83_v24, %v87_v25  ;;  %v2483_v38 = vcombine.low %v84_v26, %v88_v27  ;;  %v102_v43 = vld [vmem:[#allocation6 + $0x98] sm:$0xff]  ;;  %v93_v49 = vld [vmem:[#allocation6 + $0x50] sm:$0xff] }
  0x40   :  { %332 = vmatpush1.bf16.msra.mxu0 %v2497_v20  ;;  %373 = vmatpush1.bf16.msra.mxu1 %v2499_v21  ;;  %v106_v45 = vld [vmem:[#allocation6 + $0xb8] sm:$0xff]  ;;  %v2502_v48 = vcombine.high %v101_v40, %v105_v42  ;;  %v97_v51 = vld [vmem:[#allocation6 + $0x70] sm:$0xff]  ;;  %v2501_v54 = vcombine.low %v101_v40, %v105_v42 }
  0x41   :  { %333 = vmatprep.subr.bf16.mxu0 %v2490_v22  ;;  %374 = vmatprep.subr.bf16.mxu1 %v2492_v23  ;;  %v2504_v50 = vcombine.high %v102_v43, %v106_v45  ;;  %v94_v52 = vld [vmem:[#allocation6 + $0x58] sm:$0xff]  ;;  %v2503_v55 = vcombine.low %v102_v43, %v106_v45  ;;  %v2494_v56 = vcombine.high %v93_v49, %v97_v51  ;;  %v85_v57 = vld [vmem:[#allocation6 + $0x10] sm:$0xff] }
  0x42   :  { %v98_v53 = vld [vmem:[#allocation6 + $0x78] sm:$0xff]  ;;  %v89_v59 = vld [vmem:[#allocation6 + $0x30] sm:$0xff]  ;;  %v2493_v62 = vcombine.low %v93_v49, %v97_v51 }
  0x43   :  { %v2496_v58 = vcombine.high %v94_v52, %v98_v53  ;;  %v86_v60 = vld [vmem:[#allocation6 + $0x18] sm:$0xff]  ;;  %v2495_v63 = vcombine.low %v94_v52, %v98_v53  ;;  %v2486_v0 = vcombine.high %v85_v57, %v89_v59  ;;  %v2485_v3 = vcombine.low %v85_v57, %v89_v59 }
  0x44   :  { %334 = vmatpush1.bf16.msra.mxu0 %v2489_v28  ;;  %375 = vmatpush1.bf16.msra.mxu1 %v2491_v29  ;;  %v90_v61 = vld [vmem:[#allocation6 + $0x38] sm:$0xff] }
  0x45   :  { %335 = vmatprep.subr.bf16.mxu0 %v2482_v30  ;;  %376 = vmatprep.subr.bf16.mxu1 %v2484_v31  ;;  %v2488_v2 = vcombine.high %v86_v60, %v90_v61  ;;  %v2487_v4 = vcombine.low %v86_v60, %v90_v61  ;;  %v2787_v5 = vld [vmem:[#allocation9 + $0xe4] ss:$16 sps:$4 sm:$0xff]   ;;  %v2785_v7 = vld [vmem:[#allocation9 + $0xe0] ss:$16 sps:$4 sm:$0xff]  }
  0x46   :  { %v2790_v6 = vld [vmem:[#allocation9 + $0x2e4] ss:$16 sps:$4 sm:$0xff]   ;;  %v2791_v10 = vld [vmem:[#allocation9 + $0xc0] ss:$16 sps:$4 sm:$0xff]  }
  0x47   :  { %v2793_v8 = vld [vmem:[#allocation9 + $0xc4] ss:$16 sps:$4 sm:$0xff]   ;;  %v2794_v11 = vld [vmem:[#allocation9 + $0x2c0] ss:$16 sps:$4 sm:$0xff]  }
  0x48   :  { %336 = vmatpush1.bf16.msra.mxu0 %v2481_v36  ;;  %377 = vmatpush1.bf16.msra.mxu1 %v2483_v38  ;;  %v2796_v9 = vld [vmem:[#allocation9 + $0x2c4] ss:$16 sps:$4 sm:$0xff]   ;;  %v2797_v14 = vld [vmem:[#allocation9 + $0xa0] ss:$16 sps:$4 sm:$0xff]  }
  0x49   :  { %411 = vmatprep.subr.bf16.mxu0 %v2510_v39  ;;  %452 = vmatprep.subr.bf16.mxu1 %v2512_v41  ;;  %v2799_v12 = vld [vmem:[#allocation9 + $0xa4] ss:$16 sps:$4 sm:$0xff]   ;;  %v2800_v15 = vld [vmem:[#allocation9 + $0x2a0] ss:$16 sps:$4 sm:$0xff]  }
  0x4a   :  { %v2802_v13 = vld [vmem:[#allocation9 + $0x2a4] ss:$16 sps:$4 sm:$0xff]   ;;  %v2803_v18 = vld [vmem:[#allocation9 + $0x80] ss:$16 sps:$4 sm:$0xff]  }
  0x4b   :  { %2513 = vmatmul.mubr.msk.bf16.vlgmr.msra.gmra.mxu0 %vm317_vm0, %v82_v44  ;;  %2514 = vmatmul.mubr.msk.bf16.vlgmr.msra.gmra.mxu1 %vm317_vm0, %v82_v44  ;;  %v2805_v16 = vld [vmem:[#allocation9 + $0x84] ss:$16 sps:$4 sm:$0xff]   ;;  %v2806_v19 = vld [vmem:[#allocation9 + $0x280] ss:$16 sps:$4 sm:$0xff]  }
  0x4c   :  { %412 = vmatpush1.bf16.msra.mxu0 %v2509_v46  ;;  %453 = vmatpush1.bf16.msra.mxu1 %v2511_v47  ;;  %v2808_v17 = vld [vmem:[#allocation9 + $0x284] ss:$16 sps:$4 sm:$0xff]   ;;  %v2809_v21 = vld [vmem:[#allocation9 + $0x60] ss:$16 sps:$4 sm:$0xff]  }
  0x4d   :  { %413 = vmatprep.subr.bf16.mxu0 %v2502_v48  ;;  %454 = vmatprep.subr.bf16.mxu1 %v2504_v50  ;;  %v2811_v20 = vld [vmem:[#allocation9 + $0x64] ss:$16 sps:$4 sm:$0xff]   ;;  %v2812_v23 = vld [vmem:[#allocation9 + $0x260] ss:$16 sps:$4 sm:$0xff]  }
  0x4e   :  { %435 = vmatprep.mubr.bf16.mxu0 %v3285_v1  ;;  %476 = vmatprep.mubr.bf16.mxu1 %v3285_v1  ;;  %v2788_v1 = vld [vmem:[#allocation9 + $0x2e0] ss:$16 sps:$4 sm:$0xff]   ;;  %v2814_v22 = vld [vmem:[#allocation9 + $0x264] ss:$16 sps:$4 sm:$0xff]  }
  0x4f   :  { %v2817_v24 = vld [vmem:[#allocation9 + $0x44] ss:$16 sps:$4 sm:$0xff]   ;;  %v2815_v26 = vld [vmem:[#allocation9 + $0x40] ss:$16 sps:$4 sm:$0xff]  }
  0x50   :  { %414 = vmatpush1.bf16.msra.mxu0 %v2501_v54  ;;  %455 = vmatpush1.bf16.msra.mxu1 %v2503_v55  ;;  %v2820_v25 = vld [vmem:[#allocation9 + $0x244] ss:$16 sps:$4 sm:$0xff]   ;;  %v2818_v27 = vld [vmem:[#allocation9 + $0x240] ss:$16 sps:$4 sm:$0xff]  }
  0x51   :  { %415 = vmatprep.subr.bf16.mxu0 %v2494_v56  ;;  %456 = vmatprep.subr.bf16.mxu1 %v2496_v58  ;;  %v2823_v28 = vld [vmem:[#allocation9 + $0x24] ss:$16 sps:$4 sm:$0xff]   ;;  %v2821_v30 = vld [vmem:[#allocation9 + $0x20] ss:$16 sps:$4 sm:$0xff]  }
  0x52   :  { %v2826_v29 = vld [vmem:[#allocation9 + $0x224] ss:$16 sps:$4 sm:$0xff]   ;;  %v2824_v31 = vld [vmem:[#allocation9 + $0x220] ss:$16 sps:$4 sm:$0xff]  }
  0x53   :  { %v2829_v32 = vld [vmem:[#allocation9 + $0x4] ss:$16 sps:$4 sm:$0xff]   ;;  %v2827_v34 = vld [vmem:[#allocation9] ss:$16 sps:$4 sm:$0xff]  }
  0x54   :  { %416 = vmatpush1.bf16.msra.mxu0 %v2493_v62  ;;  %457 = vmatpush1.bf16.msra.mxu1 %v2495_v63  ;;  %v2832_v33 = vld [vmem:[#allocation9 + $0x204] ss:$16 sps:$4 sm:$0xff]   ;;  %v2830_v35 = vld [vmem:[#allocation9 + $0x200] ss:$16 sps:$4 sm:$0xff]  }
  0x55   :  { %417 = vmatprep.subr.bf16.mxu0 %v2486_v0  ;;  %458 = vmatprep.subr.bf16.mxu1 %v2488_v2  ;;  %v2835_v36 = vld [vmem:[#allocation9 + $0x1e4] ss:$16 sps:$4 sm:$0xff]   ;;  %v2833_v38 = vld [vmem:[#allocation9 + $0x1e0] ss:$16 sps:$4 sm:$0xff]  }
  0x56   :  { %v2838_v37 = vld [vmem:[#allocation9 + $0x3e4] ss:$16 sps:$4 sm:$0xff]   ;;  %v2836_v39 = vld [vmem:[#allocation9 + $0x3e0] ss:$16 sps:$4 sm:$0xff]  }
  0x57   :  { %v2841_v40 = vld [vmem:[#allocation9 + $0x1c4] ss:$16 sps:$4 sm:$0xff]   ;;  %v2839_v42 = vld [vmem:[#allocation9 + $0x1c0] ss:$16 sps:$4 sm:$0xff]  }
  0x58   :  { %418 = vmatpush1.bf16.msra.mxu0 %v2485_v3  ;;  %459 = vmatpush1.bf16.msra.mxu1 %v2487_v4  ;;  %v2844_v41 = vld [vmem:[#allocation9 + $0x3c4] ss:$16 sps:$4 sm:$0xff]   ;;  %v2842_v43 = vld [vmem:[#allocation9 + $0x3c0] ss:$16 sps:$4 sm:$0xff]  }
  0x59   :  { %2059 = vmatprep.subr.bf16.mxu0 %v2787_v5  ;;  %2100 = vmatprep.subr.bf16.mxu1 %v2790_v6  ;;  %v2850_v45 = vld [vmem:[#allocation9 + $0x3a4] ss:$16 sps:$4 sm:$0xff]   ;;  %v2845_v46 = vld [vmem:[#allocation9 + $0x1a0] ss:$16 sps:$4 sm:$0xff]  }
  0x5a   :  { %v2848_v47 = vld [vmem:[#allocation9 + $0x3a0] ss:$16 sps:$4 sm:$0xff]   ;;  %v2853_v48 = vld [vmem:[#allocation9 + $0x184] ss:$16 sps:$4 sm:$0xff]  }
  0x5b   :  { %2515 = vmatmul.mubr.msk.bf16.vlgmr.msra.gmra.mxu0 %vm317_vm0, %v82_v44  ;;  %2516 = vmatmul.mubr.msk.bf16.vlgmr.msra.gmra.mxu1 %vm317_vm0, %v82_v44  ;;  %v2847_v44 = vld [vmem:[#allocation9 + $0x1a4] ss:$16 sps:$4 sm:$0xff]   ;;  %v2851_v50 = vld [vmem:[#allocation9 + $0x180] ss:$16 sps:$4 sm:$0xff]  }
  0x5c   :  { %2060 = vmatpush1.bf16.msra.mxu0 %v2785_v7  ;;  %2101 = vmatpush1.bf16.msra.mxu1 %v2788_v1  ;;  %v2856_v49 = vld [vmem:[#allocation9 + $0x384] ss:$16 sps:$4 sm:$0xff]   ;;  %v2854_v51 = vld [vmem:[#allocation9 + $0x380] ss:$16 sps:$4 sm:$0xff]   ;;  %v117_v7 = vlaneseq }
  0x5d   :  { %2061 = vmatprep.subr.bf16.mxu0 %v2793_v8  ;;  %2102 = vmatprep.subr.bf16.mxu1 %v2796_v9  ;;  %v2859_v52 = vld [vmem:[#allocation9 + $0x164] ss:$16 sps:$4 sm:$0xff]   ;;  %v2857_v54 = vld [vmem:[#allocation9 + $0x160] ss:$16 sps:$4 sm:$0xff]   ;;  %v3355_v9 = vld [vmem:[#allocation8] sm:$0xff] }
  0x5e   :  { %v2862_v53 = vld [vmem:[#allocation9 + $0x364] ss:$16 sps:$4 sm:$0xff]   ;;  %v2860_v55 = vld [vmem:[#allocation9 + $0x360] ss:$16 sps:$4 sm:$0xff]   ;;  %v3350_v1 = vshrl.u32 %v117_v7, 7 }
  0x5f   :  { %v2865_v56 = vld [vmem:[#allocation9 + $0x144] ss:$16 sps:$4 sm:$0xff]   ;;  %v2863_v58 = vld [vmem:[#allocation9 + $0x140] ss:$16 sps:$4 sm:$0xff]  }
  0x60   :  { %2062 = vmatpush1.bf16.msra.mxu0 %v2791_v10  ;;  %2103 = vmatpush1.bf16.msra.mxu1 %v2794_v11  ;;  %v2868_v57 = vld [vmem:[#allocation9 + $0x344] ss:$16 sps:$4 sm:$0xff]   ;;  %v2866_v59 = vld [vmem:[#allocation9 + $0x340] ss:$16 sps:$4 sm:$0xff]   ;;  %v3353_v8 = vsub.s32 0, %v3350_v1  ;;  %v3358_v10 = vsub.s32 2, %v3350_v1 }
  0x61   :  { %2063 = vmatprep.subr.bf16.mxu0 %v2799_v12  ;;  %2104 = vmatprep.subr.bf16.mxu1 %v2802_v13  ;;  %v2871_v60 = vld [vmem:[#allocation9 + $0x124] ss:$16 sps:$4 sm:$0xff]   ;;  %v2869_v62 = vld [vmem:[#allocation9 + $0x120] ss:$16 sps:$4 sm:$0xff]   ;;  %v3361_v11 = vsub.s32 1, %v3350_v1  ;;  %v3364_v12 = vsub.s32 3, %v3350_v1 }
  0x62   :  { %v2874_v61 = vld [vmem:[#allocation9 + $0x324] ss:$16 sps:$4 sm:$0xff]   ;;  %v2872_v63 = vld [vmem:[#allocation9 + $0x320] ss:$16 sps:$4 sm:$0xff]   ;;  %v120_v13 = vrot.slane %v3355_v9, %v3353_v8 }
  0x63   :  { %v2877_v0 = vld [vmem:[#allocation9 + $0x104] ss:$16 sps:$4 sm:$0xff]   ;;  %v2875_v3 = vld [vmem:[#allocation9 + $0x100] ss:$16 sps:$4 sm:$0xff]  }
  0x64   :  { %2064 = vmatpush1.bf16.msra.mxu0 %v2797_v14  ;;  %2105 = vmatpush1.bf16.msra.mxu1 %v2800_v15  ;;  %v2880_v2 = vld [vmem:[#allocation9 + $0x304] ss:$16 sps:$4 sm:$0xff]   ;;  %v2878_v4 = vld [vmem:[#allocation9 + $0x300] ss:$16 sps:$4 sm:$0xff]   ;;  %v128_v14 = vrot.slane %v3355_v9, %v3358_v10  ;;  %v124_v15 = vrot.slane %v3355_v9, %v3361_v11 }
  0x65   :  { %2065 = vmatprep.subr.bf16.mxu0 %v2805_v16  ;;  %2106 = vmatprep.subr.bf16.mxu1 %v2808_v17  ;;  %v2883_v5 = vld [vmem:[#allocation9 + $0x4e4] ss:$16 sps:$4 sm:$0xff]   ;;  %v132_v17 = vrot.slane %v3355_v9, %v3364_v12 }
  0x66   :  { %v2886_v6 = vld [vmem:[#allocation9 + $0x6e4] ss:$16 sps:$4 sm:$0xff]  }
  0x68   :  { %2066 = vmatpush1.bf16.msra.mxu0 %v2803_v18  ;;  %2107 = vmatpush1.bf16.msra.mxu1 %v2806_v19 }
  0x69   :  { %2067 = vmatprep.subr.bf16.mxu0 %v2811_v20  ;;  %2108 = vmatprep.subr.bf16.mxu1 %v2814_v22 }
  0x6c   :  { %2068 = vmatpush1.bf16.msra.mxu0 %v2809_v21  ;;  %2109 = vmatpush1.bf16.msra.mxu1 %v2812_v23 }
  0x6d   :  { %2069 = vmatprep.subr.bf16.mxu0 %v2817_v24  ;;  %2110 = vmatprep.subr.bf16.mxu1 %v2820_v25 }
  0x70   :  { %2070 = vmatpush1.bf16.msra.mxu0 %v2815_v26  ;;  %2111 = vmatpush1.bf16.msra.mxu1 %v2818_v27 }
  0x71   :  { %2071 = vmatprep.subr.bf16.mxu0 %v2823_v28  ;;  %2112 = vmatprep.subr.bf16.mxu1 %v2826_v29 }
  0x74   :  { %2072 = vmatpush1.bf16.msra.mxu0 %v2821_v30  ;;  %2113 = vmatpush1.bf16.msra.mxu1 %v2824_v31 }
  0x75   :  { %2073 = vmatprep.subr.bf16.mxu0 %v2829_v32  ;;  %2114 = vmatprep.subr.bf16.mxu1 %v2832_v33 }
  0x78   :  { %2074 = vmatpush1.bf16.msra.mxu0 %v2827_v34  ;;  %2115 = vmatpush1.bf16.msra.mxu1 %v2830_v35  ;;  %v2881_v35 = vld [vmem:[#allocation9 + $0x4e0] ss:$16 sps:$4 sm:$0xff]  }
  0x79   :  { %2075 = vmatprep.subr.bf16.mxu0 %v2835_v36  ;;  %2116 = vmatprep.subr.bf16.mxu1 %v2838_v37 }
  0x7c   :  { %2076 = vmatpush2.bf16.msra.mxu0 %v2833_v38  ;;  %2117 = vmatpush2.bf16.msra.mxu1 %v2836_v39  ;;  %v2884_v38 = vld [vmem:[#allocation9 + $0x6e0] ss:$16 sps:$4 sm:$0xff]   ;;  %v2889_v39 = vld [vmem:[#allocation9 + $0x4c4] ss:$16 sps:$4 sm:$0xff]  }
  0x7d   :  { %2077 = vmatprep.subr.bf16.mxu0 %v2841_v40  ;;  %2118 = vmatprep.subr.bf16.mxu1 %v2844_v41  ;;  %v2892_v40 = vld [vmem:[#allocation9 + $0x6c4] ss:$16 sps:$4 sm:$0xff]   ;;  %v2887_v41 = vld [vmem:[#allocation9 + $0x4c0] ss:$16 sps:$4 sm:$0xff]  }
  0x80   :  { %2078 = vmatpush2.bf16.msra.mxu0 %v2839_v42  ;;  %2119 = vmatpush2.bf16.msra.mxu1 %v2842_v43  ;;  %v139_v42 = vsub.s32 5, %v3350_v1  ;;  %v2890_v43 = vld [vmem:[#allocation9 + $0x6c0] ss:$16 sps:$4 sm:$0xff]  }
  0x81   :  { %2079 = vmatprep.subr.bf16.mxu0 %v2847_v44  ;;  %2120 = vmatprep.subr.bf16.mxu1 %v2850_v45  ;;  %v2895_v44 = vld [vmem:[#allocation9 + $0x4a4] ss:$16 sps:$4 sm:$0xff]   ;;  %v147_v45 = vsub.s32 7, %v3350_v1 }
  0x84   :  { %2080 = vmatpush2.bf16.msra.mxu0 %v2845_v46  ;;  %2121 = vmatpush2.bf16.msra.mxu1 %v2848_v47  ;;  %v2898_v46 = vld [vmem:[#allocation9 + $0x6a4] ss:$16 sps:$4 sm:$0xff]   ;;  %v2893_v47 = vld [vmem:[#allocation9 + $0x4a0] ss:$16 sps:$4 sm:$0xff]  }
  0x85   :  { %2081 = vmatprep.subr.bf16.mxu0 %v2853_v48  ;;  %2122 = vmatprep.subr.bf16.mxu1 %v2856_v49  ;;  %v140_v48 = vrot.slane %v3355_v9, %v139_v42  ;;  %v2896_v49 = vld [vmem:[#allocation9 + $0x6a0] ss:$16 sps:$4 sm:$0xff]  }
  0x86   :  { %v2944_v42 = vld [vmem:[#allocation9 + $0x7a0] ss:$16 sps:$4 sm:$0xff]  }
  0x88   :  { %2082 = vmatpush2.bf16.msra.mxu0 %v2851_v50  ;;  %2123 = vmatpush2.bf16.msra.mxu1 %v2854_v51  ;;  %v2901_v50 = vld [vmem:[#allocation9 + $0x484] ss:$16 sps:$4 sm:$0xff]  }
  0x89   :  { %2083 = vmatprep.subr.bf16.mxu0 %v2859_v52  ;;  %2124 = vmatprep.subr.bf16.mxu1 %v2862_v53  ;;  %v148_v52 = vrot.slane %v3355_v9, %v147_v45  ;;  %v2904_v53 = vld [vmem:[#allocation9 + $0x684] ss:$16 sps:$4 sm:$0xff]   ;;  %v2947_v45 = vld [vmem:[#allocation9 + $0x580] ss:$16 sps:$4 sm:$0xff]  }
  0x8c   :  { %2084 = vmatpush2.bf16.msra.mxu0 %v2857_v54  ;;  %2125 = vmatpush2.bf16.msra.mxu1 %v2860_v55 }
  0x8d   :  { %2085 = vmatprep.subr.bf16.mxu0 %v2865_v56  ;;  %2126 = vmatprep.subr.bf16.mxu1 %v2868_v57  ;;  %v2899_v56 = vld [vmem:[#allocation9 + $0x480] ss:$16 sps:$4 sm:$0xff]  }
  0x90   :  { %2086 = vmatpush2.bf16.msra.mxu0 %v2863_v58  ;;  %2127 = vmatpush2.bf16.msra.mxu1 %v2866_v59  ;;  %v2902_v59 = vld [vmem:[#allocation9 + $0x680] ss:$16 sps:$4 sm:$0xff]  }
  0x91   :  { %2087 = vmatprep.subr.bf16.mxu0 %v2871_v60  ;;  %2128 = vmatprep.subr.bf16.mxu1 %v2874_v61  ;;  %v2907_v60 = vld [vmem:[#allocation9 + $0x464] ss:$16 sps:$4 sm:$0xff]  }
  0x94   :  { %2088 = vmatpush2.bf16.msra.mxu0 %v2869_v62  ;;  %2129 = vmatpush2.bf16.msra.mxu1 %v2872_v63  ;;  %v2910_v63 = vld [vmem:[#allocation9 + $0x664] ss:$16 sps:$4 sm:$0xff]  }
  0x95   :  { %2089 = vmatprep.subr.bf16.mxu0 %v2877_v0  ;;  %2130 = vmatprep.subr.bf16.mxu1 %v2880_v2 }
  0x98   :  { %2090 = vmatpush2.bf16.msra.mxu0 %v2875_v3  ;;  %2131 = vmatpush2.bf16.msra.mxu1 %v2878_v4 }
  0x99   :  { %2141 = vmatprep.subr.bf16.mxu0 %v2883_v5  ;;  %2182 = vmatprep.subr.bf16.mxu1 %v2886_v6  ;;  %v2905_v5 = vld [vmem:[#allocation9 + $0x460] ss:$16 sps:$4 sm:$0xff]  }
 0x10b   :  { %v355_v16 = vpop.f32.mrf.mxu0  ;;  %v396_v19 = vpop.f32.mrf.mxu1 }
 0x10c   :  { %v356_v18 = vadd.f32 %v355_v16, %v120_v13  ;;  %v397_v20 = vadd.f32 %v396_v19, %v128_v14  ;;  %v2908_v13 = vld [vmem:[#allocation9 + $0x660] ss:$16 sps:$4 sm:$0xff]   ;;  %v2913_v14 = vld [vmem:[#allocation9 + $0x444] ss:$16 sps:$4 sm:$0xff]  }
 0x10d   :  { %v357_v21 = vpop.f32.mrf.mxu0  ;;  %v398_v23 = vpop.f32.mrf.mxu1  ;;  %v2916_v16 = vld [vmem:[#allocation9 + $0x644] ss:$16 sps:$4 sm:$0xff]  }
 0x10e   :  { %v358_v22 = vadd.f32 %v357_v21, %v124_v15  ;;  %v485_v24 = vmax.f32 %v356_v18, 0.0  ;;  %v487_v25 = vmax.f32 %v397_v20, 0.0  ;;  %v399_v26 = vadd.f32 %v398_v23, %v132_v17  ;;  %v2911_v17 = vld [vmem:[#allocation9 + $0x440] ss:$16 sps:$4 sm:$0xff]   ;;  %v2919_v19 = vld [vmem:[#allocation9 + $0x424] ss:$16 sps:$4 sm:$0xff]  }
 0x10f   :  { %v359_v27 = vpop.f32.mrf.mxu0  ;;  %v400_v29 = vpop.f32.mrf.mxu1  ;;  %v2914_v18 = vld [vmem:[#allocation9 + $0x640] ss:$16 sps:$4 sm:$0xff]   ;;  %v2922_v20 = vld [vmem:[#allocation9 + $0x624] ss:$16 sps:$4 sm:$0xff]  }
 0x110   :  { %v486_v28 = vmax.f32 %v358_v22, 0.0  ;;  %v488_v30 = vmax.f32 %v399_v26, 0.0  ;;  %v3374_v32 = vpack.c.bf16 %v487_v25, %v487_v25  ;;  %v3378_v36 = vpack.c.bf16 %v485_v24, %v485_v24  ;;  %v2917_v21 = vld [vmem:[#allocation9 + $0x420] ss:$16 sps:$4 sm:$0xff]   ;;  %v2925_v23 = vld [vmem:[#allocation9 + $0x404] ss:$16 sps:$4 sm:$0xff]  }
 0x111   :  { %v360_v31 = vpop.f32.mrf.mxu0  ;;  %v401_v34 = vpop.f32.mrf.mxu1  ;;  %v2920_v22 = vld [vmem:[#allocation9 + $0x620] ss:$16 sps:$4 sm:$0xff]   ;;  %v2928_v24 = vld [vmem:[#allocation9 + $0x604] ss:$16 sps:$4 sm:$0xff]  }
 0x112   :  { %v3376_v33 = vpack.c.bf16 %v486_v28, %v486_v28  ;;  %v3380_v37 = vpack.c.bf16 %v488_v30, %v488_v30  ;;  %v2923_v25 = vld [vmem:[#allocation9 + $0x400] ss:$16 sps:$4 sm:$0xff]   ;;  %v2931_v27 = vld [vmem:[#allocation9 + $0x5e4] ss:$16 sps:$4 sm:$0xff]  }
 0x113   :  { %v2926_v26 = vld [vmem:[#allocation9 + $0x600] ss:$16 sps:$4 sm:$0xff]   ;;  %v2934_v28 = vld [vmem:[#allocation9 + $0x7e4] ss:$16 sps:$4 sm:$0xff]  }
 0x114   :  { %2091 = vmatprep.mubr.bf16.mxu0 %v3376_v33  ;;  %2132 = vmatprep.mubr.bf16.mxu1 %v3380_v37  ;;  %v2929_v29 = vld [vmem:[#allocation9 + $0x5e0] ss:$16 sps:$4 sm:$0xff]   ;;  %v2937_v31 = vld [vmem:[#allocation9 + $0x5c4] ss:$16 sps:$4 sm:$0xff]  }
 0x115   :  { %2092 = vmatmul.mubr.bf16.vlgmr.msra.gmra.mxu0 %v3378_v36  ;;  %2133 = vmatmul.mubr.bf16.vlgmr.msra.gmra.mxu1 %v3374_v32  ;;  %v2932_v30 = vld [vmem:[#allocation9 + $0x7e0] ss:$16 sps:$4 sm:$0xff]   ;;  %v2940_v34 = vld [vmem:[#allocation9 + $0x7c4] ss:$16 sps:$4 sm:$0xff]  }
 0x116   :  { %2142 = vmatpush1.bf16.msra.mxu0 %v2881_v35  ;;  %2183 = vmatpush1.bf16.msra.mxu1 %v2884_v38  ;;  %v2935_v35 = vld [vmem:[#allocation9 + $0x5c0] ss:$16 sps:$4 sm:$0xff]  }
 0x117   :  { %2143 = vmatprep.subr.bf16.mxu0 %v2889_v39  ;;  %2184 = vmatprep.subr.bf16.mxu1 %v2892_v40  ;;  %v2938_v38 = vld [vmem:[#allocation9 + $0x7c0] ss:$16 sps:$4 sm:$0xff]   ;;  %v2943_v39 = vld [vmem:[#allocation9 + $0x5a4] ss:$16 sps:$4 sm:$0xff]  }
 0x118   :  { %v2946_v40 = vld [vmem:[#allocation9 + $0x7a4] ss:$16 sps:$4 sm:$0xff]  }
 0x11a   :  { %2144 = vmatpush1.bf16.msra.mxu0 %v2887_v41  ;;  %2185 = vmatpush1.bf16.msra.mxu1 %v2890_v43  ;;  %v2941_v41 = vld [vmem:[#allocation9 + $0x5a0] ss:$16 sps:$4 sm:$0xff]   ;;  %v2949_v43 = vld [vmem:[#allocation9 + $0x584] ss:$16 sps:$4 sm:$0xff]  }
 0x11b   :  { %2145 = vmatprep.subr.bf16.mxu0 %v2895_v44  ;;  %v3389_v51 = vpop.f32.mrf.mxu0  ;;  %2186 = vmatprep.subr.bf16.mxu1 %v2898_v46  ;;  %v3392_v54 = vpop.f32.mrf.mxu1  ;;  %v2952_v44 = vld [vmem:[#allocation9 + $0x784] ss:$16 sps:$4 sm:$0xff]   ;;  %v2950_v46 = vld [vmem:[#allocation9 + $0x780] ss:$16 sps:$4 sm:$0xff]  }
 0x11d   :  { %v439_v55 = vpop.f32.mrf.mxu0  ;;  %v480_v58 = vpop.f32.mrf.mxu1 }
 0x11e   :  { %2146 = vmatpush1.bf16.msra.mxu0 %v2893_v47  ;;  %v440_v57 = vadd.f32 %v439_v55, %v140_v48  ;;  %2187 = vmatpush1.bf16.msra.mxu1 %v2896_v49  ;;  %v481_v62 = vadd.f32 %v480_v58, %v148_v52  ;;  %v2955_v47 = vld [vmem:[#allocation9 + $0x564] ss:$16 sps:$4 sm:$0xff]   ;;  %v2953_v49 = vld [vmem:[#allocation9 + $0x560] ss:$16 sps:$4 sm:$0xff]  }
 0x11f   :  { %2147 = vmatprep.subr.bf16.mxu0 %v2901_v50  ;;  %v441_v61 = vpop.f32.mrf.mxu0  ;;  %2188 = vmatprep.subr.bf16.mxu1 %v2904_v53  ;;  %v482_v2 = vpop.f32.mrf.mxu1  ;;  %v2958_v48 = vld [vmem:[#allocation9 + $0x764] ss:$16 sps:$4 sm:$0xff]   ;;  %v143_v50 = vsub.s32 6, %v3350_v1  ;;  %v2956_v52 = vld [vmem:[#allocation9 + $0x760] ss:$16 sps:$4 sm:$0xff]   ;;  %v135_v53 = vsub.s32 4, %v3350_v1 }
 0x120   :  { %v490_v0 = vmax.f32 %v440_v57, 0.0  ;;  %v492_v3 = vmax.f32 %v481_v62, 0.0  ;;  %v2961_v55 = vld [vmem:[#allocation9 + $0x544] ss:$16 sps:$4 sm:$0xff]   ;;  %v2959_v58 = vld [vmem:[#allocation9 + $0x540] ss:$16 sps:$4 sm:$0xff]  }
 0x121   :  { %v442_v4 = vpop.f32.mrf.mxu0  ;;  %v483_v7 = vpop.f32.mrf.mxu1  ;;  %v144_v57 = vrot.slane %v3355_v9, %v143_v50  ;;  %v2967_v61 = vld [vmem:[#allocation9 + $0x524] ss:$16 sps:$4 sm:$0xff]   ;;  %v2968_v2 = vld [vmem:[#allocation9 + $0x720] ss:$16 sps:$4 sm:$0xff]   ;;  %v3030_v50 = vld [vmem:[#allocation9 + $0x3ec] ss:$16 sps:$4 sm:$0xff]  }
 0x122   :  { %2148 = vmatpush1.bf16.msra.mxu0 %v2899_v56  ;;  %v3394_v6 = vpack.c.bf16 %v490_v0, %v490_v0  ;;  %2189 = vmatpush1.bf16.msra.mxu1 %v2902_v59  ;;  %v3396_v15 = vpack.c.bf16 %v492_v3, %v492_v3  ;;  %v2964_v56 = vld [vmem:[#allocation9 + $0x744] ss:$16 sps:$4 sm:$0xff]   ;;  %v136_v59 = vrot.slane %v3355_v9, %v135_v53  ;;  %v2965_v0 = vld [vmem:[#allocation9 + $0x520] ss:$16 sps:$4 sm:$0xff]   ;;  %v3028_v53 = vld [vmem:[#allocation9 + $0x3e8] ss:$16 sps:$4 sm:$0xff]  }
 0x123   :  { %2149 = vmatprep.subr.bf16.mxu0 %v2907_v60  ;;  %2190 = vmatprep.subr.bf16.mxu1 %v2910_v63  ;;  %v2962_v60 = vld [vmem:[#allocation9 + $0x740] ss:$16 sps:$4 sm:$0xff]   ;;  %v2970_v62 = vld [vmem:[#allocation9 + $0x724] ss:$16 sps:$4 sm:$0xff]   ;;  %v479_v63 = vadd.f32 %v3392_v54, %v144_v57  ;;  %v2982_v54 = vld [vmem:[#allocation9 + $0x2ec] ss:$16 sps:$4 sm:$0xff]  }
 0x124   :  { %2173 = vmatprep.mubr.bf16.mxu0 %v3394_v6  ;;  %2214 = vmatprep.mubr.bf16.mxu1 %v3396_v15  ;;  %v438_v1 = vadd.f32 %v3389_v51, %v136_v59  ;;  %v2973_v3 = vld [vmem:[#allocation9 + $0x504] ss:$16 sps:$4 sm:$0xff]   ;;  %v2971_v9 = vld [vmem:[#allocation9 + $0x500] ss:$16 sps:$4 sm:$0xff]   ;;  %v2977_v51 = vld [vmem:[#allocation9 + $0xe8] ss:$16 sps:$4 sm:$0xff]  }
 0x125   :  { %v2976_v4 = vld [vmem:[#allocation9 + $0x704] ss:$16 sps:$4 sm:$0xff]   ;;  %v3031_v57 = vld [vmem:[#allocation9 + $0x1c8] ss:$16 sps:$4 sm:$0xff]   ;;  %v3039_v59 = vld [vmem:[#allocation9 + $0x1ac] ss:$16 sps:$4 sm:$0xff]  }
 0x126   :  { %2150 = vmatpush1.bf16.msra.mxu0 %v2905_v5  ;;  %2191 = vmatpush1.bf16.msra.mxu1 %v2908_v13  ;;  %v491_v5 = vmax.f32 %v479_v63, 0.0  ;;  %v489_v7 = vmax.f32 %v438_v1, 0.0  ;;  %v2974_v13 = vld [vmem:[#allocation9 + $0x700] ss:$16 sps:$4 sm:$0xff]   ;;  %v3045_v63 = vld [vmem:[#allocation9 + $0x18c] ss:$16 sps:$4 sm:$0xff]  }
 0x127   :  { %2151 = vmatprep.subr.bf16.mxu0 %v2913_v14  ;;  %2192 = vmatprep.subr.bf16.mxu1 %v2916_v16  ;;  %v2979_v14 = vld [vmem:[#allocation9 + $0xec] ss:$16 sps:$4 sm:$0xff]   ;;  %v3043_v1 = vld [vmem:[#allocation9 + $0x188] ss:$16 sps:$4 sm:$0xff]  }
 0x128   :  { %v3406_v16 = vpack.c.bf16 %v491_v5, %v491_v5  ;;  %v3049_v5 = vld [vmem:[#allocation9 + $0x168] ss:$16 sps:$4 sm:$0xff]  }
 0x12a   :  { %2152 = vmatpush1.bf16.msra.mxu0 %v2911_v17  ;;  %2193 = vmatpush1.bf16.msra.mxu1 %v2914_v18  ;;  %v3408_v17 = vpack.c.bf16 %v489_v7, %v489_v7  ;;  %v2980_v18 = vld [vmem:[#allocation9 + $0x2e8] ss:$16 sps:$4 sm:$0xff]   ;;  %v3057_v7 = vld [vmem:[#allocation9 + $0x14c] ss:$16 sps:$4 sm:$0xff]  }
 0x12b   :  { %2153 = vmatprep.subr.bf16.mxu0 %v2919_v19  ;;  %2194 = vmatprep.subr.bf16.mxu1 %v2922_v20  ;;  %v2985_v19 = vld [vmem:[#allocation9 + $0xcc] ss:$16 sps:$4 sm:$0xff]  }
 0x12c   :  { %v2988_v20 = vld [vmem:[#allocation9 + $0x2cc] ss:$16 sps:$4 sm:$0xff]  }
 0x12e   :  { %2154 = vmatpush1.bf16.msra.mxu0 %v2917_v21  ;;  %2195 = vmatpush1.bf16.msra.mxu1 %v2920_v22  ;;  %v2983_v21 = vld [vmem:[#allocation9 + $0xc8] ss:$16 sps:$4 sm:$0xff]  }
 0x12f   :  { %2155 = vmatprep.subr.bf16.mxu0 %v2925_v23  ;;  %2196 = vmatprep.subr.bf16.mxu1 %v2928_v24  ;;  %v2986_v22 = vld [vmem:[#allocation9 + $0x2c8] ss:$16 sps:$4 sm:$0xff]   ;;  %v2991_v23 = vld [vmem:[#allocation9 + $0xac] ss:$16 sps:$4 sm:$0xff]  }
 0x130   :  { %v2994_v24 = vld [vmem:[#allocation9 + $0x2ac] ss:$16 sps:$4 sm:$0xff]  }
 0x132   :  { %2156 = vmatpush1.bf16.msra.mxu0 %v2923_v25  ;;  %2197 = vmatpush1.bf16.msra.mxu1 %v2926_v26  ;;  %v2989_v25 = vld [vmem:[#allocation9 + $0xa8] ss:$16 sps:$4 sm:$0xff]  }
 0x133   :  { %2157 = vmatprep.subr.bf16.mxu0 %v2931_v27  ;;  %2198 = vmatprep.subr.bf16.mxu1 %v2934_v28  ;;  %v2992_v26 = vld [vmem:[#allocation9 + $0x2a8] ss:$16 sps:$4 sm:$0xff]   ;;  %v2997_v27 = vld [vmem:[#allocation9 + $0x8c] ss:$16 sps:$4 sm:$0xff]  }
 0x134   :  { %v3000_v28 = vld [vmem:[#allocation9 + $0x28c] ss:$16 sps:$4 sm:$0xff]  }
 0x136   :  { %2158 = vmatpush2.bf16.msra.mxu0 %v2929_v29  ;;  %2199 = vmatpush2.bf16.msra.mxu1 %v2932_v30  ;;  %v2995_v29 = vld [vmem:[#allocation9 + $0x88] ss:$16 sps:$4 sm:$0xff]   ;;  %v3003_v30 = vld [vmem:[#allocation9 + $0x6c] ss:$16 sps:$4 sm:$0xff]  }
 0x137   :  { %2159 = vmatprep.subr.bf16.mxu0 %v2937_v31  ;;  %2200 = vmatprep.subr.bf16.mxu1 %v2940_v34  ;;  %v3006_v31 = vld [vmem:[#allocation9 + $0x26c] ss:$16 sps:$4 sm:$0xff]   ;;  %v3004_v34 = vld [vmem:[#allocation9 + $0x268] ss:$16 sps:$4 sm:$0xff]  }
 0x13a   :  { %2160 = vmatpush2.bf16.msra.mxu0 %v2935_v35  ;;  %2201 = vmatpush2.bf16.msra.mxu1 %v2938_v38  ;;  %v3009_v35 = vld [vmem:[#allocation9 + $0x4c] ss:$16 sps:$4 sm:$0xff]  }
 0x13b   :  { %2161 = vmatprep.subr.bf16.mxu0 %v2943_v39  ;;  %2202 = vmatprep.subr.bf16.mxu1 %v2946_v40  ;;  %v3012_v38 = vld [vmem:[#allocation9 + $0x24c] ss:$16 sps:$4 sm:$0xff]   ;;  %v3007_v39 = vld [vmem:[#allocation9 + $0x48] ss:$16 sps:$4 sm:$0xff]  }
 0x13c   :  { %v3010_v40 = vld [vmem:[#allocation9 + $0x248] ss:$16 sps:$4 sm:$0xff]  }
 0x13e   :  { %2162 = vmatpush2.bf16.msra.mxu0 %v2941_v41  ;;  %2203 = vmatpush2.bf16.msra.mxu1 %v2944_v42  ;;  %v3015_v41 = vld [vmem:[#allocation9 + $0x2c] ss:$16 sps:$4 sm:$0xff]  }
 0x13f   :  { %2163 = vmatprep.subr.bf16.mxu0 %v2949_v43  ;;  %2204 = vmatprep.subr.bf16.mxu1 %v2952_v44  ;;  %v3018_v42 = vld [vmem:[#allocation9 + $0x22c] ss:$16 sps:$4 sm:$0xff]   ;;  %v3013_v43 = vld [vmem:[#allocation9 + $0x28] ss:$16 sps:$4 sm:$0xff]  }
 0x140   :  { %v3016_v44 = vld [vmem:[#allocation9 + $0x228] ss:$16 sps:$4 sm:$0xff]  }
 0x142   :  { %2164 = vmatpush2.bf16.msra.mxu0 %v2947_v45  ;;  %2205 = vmatpush2.bf16.msra.mxu1 %v2950_v46  ;;  %v3021_v45 = vld [vmem:[#allocation9 + $0xc] ss:$16 sps:$4 sm:$0xff]  }
 0x143   :  { %2165 = vmatprep.subr.bf16.mxu0 %v2955_v47  ;;  %2206 = vmatprep.subr.bf16.mxu1 %v2958_v48  ;;  %v3024_v46 = vld [vmem:[#allocation9 + $0x20c] ss:$16 sps:$4 sm:$0xff]   ;;  %v3019_v47 = vld [vmem:[#allocation9 + $0x8] ss:$16 sps:$4 sm:$0xff]  }
 0x144   :  { %v3022_v48 = vld [vmem:[#allocation9 + $0x208] ss:$16 sps:$4 sm:$0xff]  }
 0x146   :  { %2166 = vmatpush2.bf16.msra.mxu0 %v2953_v49  ;;  %2207 = vmatpush2.bf16.msra.mxu1 %v2956_v52  ;;  %v3027_v49 = vld [vmem:[#allocation9 + $0x1ec] ss:$16 sps:$4 sm:$0xff]   ;;  %v3025_v52 = vld [vmem:[#allocation9 + $0x1e8] ss:$16 sps:$4 sm:$0xff]  }
 0x147   :  { %2167 = vmatprep.subr.bf16.mxu0 %v2961_v55  ;;  %2208 = vmatprep.subr.bf16.mxu1 %v2964_v56  ;;  %v3033_v55 = vld [vmem:[#allocation9 + $0x1cc] ss:$16 sps:$4 sm:$0xff]  }
 0x148   :  { %v3036_v56 = vld [vmem:[#allocation9 + $0x3cc] ss:$16 sps:$4 sm:$0xff]  }
 0x14a   :  { %2168 = vmatpush2.bf16.msra.mxu0 %v2959_v58  ;;  %2209 = vmatpush2.bf16.msra.mxu1 %v2962_v60  ;;  %v3034_v58 = vld [vmem:[#allocation9 + $0x3c8] ss:$16 sps:$4 sm:$0xff]   ;;  %v3042_v60 = vld [vmem:[#allocation9 + $0x3ac] ss:$16 sps:$4 sm:$0xff]  }
 0x14b   :  { %2169 = vmatprep.subr.bf16.mxu0 %v2967_v61  ;;  %2210 = vmatprep.subr.bf16.mxu1 %v2970_v62  ;;  %v3037_v61 = vld [vmem:[#allocation9 + $0x1a8] ss:$16 sps:$4 sm:$0xff]  }
 0x14c   :  { %v3040_v62 = vld [vmem:[#allocation9 + $0x3a8] ss:$16 sps:$4 sm:$0xff]  }
 0x14e   :  { %2170 = vmatpush2.bf16.msra.mxu0 %v2965_v0  ;;  %2211 = vmatpush2.bf16.msra.mxu1 %v2968_v2  ;;  %v3048_v0 = vld [vmem:[#allocation9 + $0x38c] ss:$16 sps:$4 sm:$0xff]   ;;  %v3046_v2 = vld [vmem:[#allocation9 + $0x388] ss:$16 sps:$4 sm:$0xff]  }
 0x14f   :  { %2171 = vmatprep.subr.bf16.mxu0 %v2973_v3  ;;  %2212 = vmatprep.subr.bf16.mxu1 %v2976_v4  ;;  %v3051_v3 = vld [vmem:[#allocation9 + $0x16c] ss:$16 sps:$4 sm:$0xff]  }
 0x150   :  { %v3054_v4 = vld [vmem:[#allocation9 + $0x36c] ss:$16 sps:$4 sm:$0xff]  }
 0x152   :  { %2172 = vmatpush2.bf16.msra.mxu0 %v2971_v9  ;;  %2213 = vmatpush2.bf16.msra.mxu1 %v2974_v13  ;;  %v3052_v9 = vld [vmem:[#allocation9 + $0x368] ss:$16 sps:$4 sm:$0xff]   ;;  %v3060_v13 = vld [vmem:[#allocation9 + $0x34c] ss:$16 sps:$4 sm:$0xff]  }
 0x153   :  { %2223 = vmatprep.subr.bf16.mxu0 %v2979_v14  ;;  %2264 = vmatprep.subr.bf16.mxu1 %v2982_v54  ;;  %v3055_v14 = vld [vmem:[#allocation9 + $0x148] ss:$16 sps:$4 sm:$0xff]  }
 0x154   :  { %v3058_v54 = vld [vmem:[#allocation9 + $0x348] ss:$16 sps:$4 sm:$0xff]  }
 0x155   :  { %2174 = vmatmul.mubr.bf16.vlgmr.msra.gmra.mxu0 %v3408_v17  ;;  %2215 = vmatmul.mubr.bf16.vlgmr.msra.gmra.mxu1 %v3406_v16 }
 0x156   :  { %2224 = vmatpush1.bf16.msra.mxu0 %v2977_v51  ;;  %2255 = vmatprep.mubr.bf16.mxu0 %v3376_v33  ;;  %v2998_v33 = vld [vmem:[#allocation9 + $0x288] ss:$16 sps:$4 sm:$0xff]   ;;  %v3063_v51 = vld [vmem:[#allocation9 + $0x12c] ss:$16 sps:$4 sm:$0xff]  }
 0x157   :  { %2265 = vmatpush1.bf16.msra.mxu1 %v2980_v18  ;;  %2296 = vmatprep.mubr.bf16.mxu1 %v3380_v37  ;;  %v3001_v37 = vld [vmem:[#allocation9 + $0x68] ss:$16 sps:$4 sm:$0xff]   ;;  %v3066_v18 = vld [vmem:[#allocation9 + $0x32c] ss:$16 sps:$4 sm:$0xff]  }
 0x158   :  { %2225 = vmatprep.subr.bf16.mxu0 %v2985_v19  ;;  %2266 = vmatprep.subr.bf16.mxu1 %v2988_v20  ;;  %v3061_v19 = vld [vmem:[#allocation9 + $0x128] ss:$16 sps:$4 sm:$0xff]  }
 0x159   :  { %v3064_v20 = vld [vmem:[#allocation9 + $0x328] ss:$16 sps:$4 sm:$0xff]  }
 0x15a   :  { %2226 = vmatpush1.bf16.msra.mxu0 %v2983_v21  ;;  %v3069_v21 = vld [vmem:[#allocation9 + $0x10c] ss:$16 sps:$4 sm:$0xff]  }
 0x15b   :  { %2267 = vmatpush1.bf16.msra.mxu1 %v2986_v22  ;;  %2227 = vmatprep.subr.bf16.mxu0 %v2991_v23  ;;  %v3072_v22 = vld [vmem:[#allocation9 + $0x30c] ss:$16 sps:$4 sm:$0xff]   ;;  %v3067_v23 = vld [vmem:[#allocation9 + $0x108] ss:$16 sps:$4 sm:$0xff]  }
 0x15c   :  { %2268 = vmatprep.subr.bf16.mxu1 %v2994_v24  ;;  %v3070_v24 = vld [vmem:[#allocation9 + $0x308] ss:$16 sps:$4 sm:$0xff]  }
 0x15e   :  { %2228 = vmatpush1.bf16.msra.mxu0 %v2989_v25  ;;  %v3075_v25 = vld [vmem:[#allocation9 + $0x4ec] ss:$16 sps:$4 sm:$0xff]  }
 0x15f   :  { %2269 = vmatpush1.bf16.msra.mxu1 %v2992_v26  ;;  %2229 = vmatprep.subr.bf16.mxu0 %v2997_v27  ;;  %v3078_v26 = vld [vmem:[#allocation9 + $0x6ec] ss:$16 sps:$4 sm:$0xff]   ;;  %v3073_v27 = vld [vmem:[#allocation9 + $0x4e8] ss:$16 sps:$4 sm:$0xff]  }
 0x160   :  { %2270 = vmatprep.subr.bf16.mxu1 %v3000_v28  ;;  %v3076_v28 = vld [vmem:[#allocation9 + $0x6e8] ss:$16 sps:$4 sm:$0xff]  }
 0x162   :  { %2230 = vmatpush1.bf16.msra.mxu0 %v2995_v29  ;;  %v3081_v29 = vld [vmem:[#allocation9 + $0x4cc] ss:$16 sps:$4 sm:$0xff]  }
 0x163   :  { %2271 = vmatpush1.bf16.msra.mxu1 %v2998_v33  ;;  %2231 = vmatprep.subr.bf16.mxu0 %v3003_v30  ;;  %v3084_v33 = vld [vmem:[#allocation9 + $0x6cc] ss:$16 sps:$4 sm:$0xff]   ;;  %v3079_v30 = vld [vmem:[#allocation9 + $0x4c8] ss:$16 sps:$4 sm:$0xff]  }
 0x164   :  { %2272 = vmatprep.subr.bf16.mxu1 %v3006_v31  ;;  %v3082_v31 = vld [vmem:[#allocation9 + $0x6c8] ss:$16 sps:$4 sm:$0xff]  }
 0x166   :  { %2232 = vmatpush1.bf16.msra.mxu0 %v3001_v37  ;;  %v3087_v37 = vld [vmem:[#allocation9 + $0x4ac] ss:$16 sps:$4 sm:$0xff]  }
 0x167   :  { %2273 = vmatpush1.bf16.msra.mxu1 %v3004_v34  ;;  %2233 = vmatprep.subr.bf16.mxu0 %v3009_v35  ;;  %v3090_v34 = vld [vmem:[#allocation9 + $0x6ac] ss:$16 sps:$4 sm:$0xff]   ;;  %v3085_v35 = vld [vmem:[#allocation9 + $0x4a8] ss:$16 sps:$4 sm:$0xff]  }
 0x168   :  { %2274 = vmatprep.subr.bf16.mxu1 %v3012_v38  ;;  %v3093_v38 = vld [vmem:[#allocation9 + $0x48c] ss:$16 sps:$4 sm:$0xff]  }
 0x16a   :  { %2234 = vmatpush1.bf16.msra.mxu0 %v3007_v39  ;;  %v3091_v39 = vld [vmem:[#allocation9 + $0x488] ss:$16 sps:$4 sm:$0xff]  }
 0x16b   :  { %2275 = vmatpush1.bf16.msra.mxu1 %v3010_v40  ;;  %2235 = vmatprep.subr.bf16.mxu0 %v3015_v41  ;;  %v3099_v40 = vld [vmem:[#allocation9 + $0x46c] ss:$16 sps:$4 sm:$0xff]  }
 0x16c   :  { %2276 = vmatprep.subr.bf16.mxu1 %v3018_v42  ;;  %v3102_v41 = vld [vmem:[#allocation9 + $0x66c] ss:$16 sps:$4 sm:$0xff]   ;;  %v3100_v42 = vld [vmem:[#allocation9 + $0x668] ss:$16 sps:$4 sm:$0xff]  }
 0x16e   :  { %2236 = vmatpush1.bf16.msra.mxu0 %v3013_v43  ;;  %v3105_v43 = vld [vmem:[#allocation9 + $0x44c] ss:$16 sps:$4 sm:$0xff]  }
 0x16f   :  { %2277 = vmatpush1.bf16.msra.mxu1 %v3016_v44  ;;  %2237 = vmatprep.subr.bf16.mxu0 %v3021_v45  ;;  %v3108_v44 = vld [vmem:[#allocation9 + $0x64c] ss:$16 sps:$4 sm:$0xff]   ;;  %v3103_v45 = vld [vmem:[#allocation9 + $0x448] ss:$16 sps:$4 sm:$0xff]  }
 0x170   :  { %2278 = vmatprep.subr.bf16.mxu1 %v3024_v46  ;;  %v3106_v46 = vld [vmem:[#allocation9 + $0x648] ss:$16 sps:$4 sm:$0xff]  }
 0x172   :  { %2238 = vmatpush1.bf16.msra.mxu0 %v3019_v47  ;;  %v3111_v47 = vld [vmem:[#allocation9 + $0x42c] ss:$16 sps:$4 sm:$0xff]  }
 0x173   :  { %2279 = vmatpush1.bf16.msra.mxu1 %v3022_v48  ;;  %2239 = vmatprep.subr.bf16.mxu0 %v3027_v49  ;;  %v3114_v48 = vld [vmem:[#allocation9 + $0x62c] ss:$16 sps:$4 sm:$0xff]   ;;  %v3109_v49 = vld [vmem:[#allocation9 + $0x428] ss:$16 sps:$4 sm:$0xff]  }
 0x174   :  { %2280 = vmatprep.subr.bf16.mxu1 %v3030_v50  ;;  %v3112_v50 = vld [vmem:[#allocation9 + $0x628] ss:$16 sps:$4 sm:$0xff]  }
 0x176   :  { %2240 = vmatpush2.bf16.msra.mxu0 %v3025_v52  ;;  %v3117_v52 = vld [vmem:[#allocation9 + $0x40c] ss:$16 sps:$4 sm:$0xff]  }
 0x177   :  { %2281 = vmatpush2.bf16.msra.mxu1 %v3028_v53  ;;  %2241 = vmatprep.subr.bf16.mxu0 %v3033_v55  ;;  %v3120_v53 = vld [vmem:[#allocation9 + $0x60c] ss:$16 sps:$4 sm:$0xff]   ;;  %v3115_v55 = vld [vmem:[#allocation9 + $0x408] ss:$16 sps:$4 sm:$0xff]  }
 0x178   :  { %2282 = vmatprep.subr.bf16.mxu1 %v3036_v56  ;;  %v3118_v56 = vld [vmem:[#allocation9 + $0x608] ss:$16 sps:$4 sm:$0xff]  }
 0x17a   :  { %2242 = vmatpush2.bf16.msra.mxu0 %v3031_v57  ;;  %v3123_v57 = vld [vmem:[#allocation9 + $0x5ec] ss:$16 sps:$4 sm:$0xff]  }
 0x17b   :  { %2283 = vmatpush2.bf16.msra.mxu1 %v3034_v58  ;;  %2243 = vmatprep.subr.bf16.mxu0 %v3039_v59  ;;  %v3126_v58 = vld [vmem:[#allocation9 + $0x7ec] ss:$16 sps:$4 sm:$0xff]   ;;  %v3121_v59 = vld [vmem:[#allocation9 + $0x5e8] ss:$16 sps:$4 sm:$0xff]  }
 0x17c   :  { %2284 = vmatprep.subr.bf16.mxu1 %v3042_v60  ;;  %v3124_v60 = vld [vmem:[#allocation9 + $0x7e8] ss:$16 sps:$4 sm:$0xff]  }
 0x17e   :  { %2244 = vmatpush2.bf16.msra.mxu0 %v3037_v61  ;;  %v3129_v61 = vld [vmem:[#allocation9 + $0x5cc] ss:$16 sps:$4 sm:$0xff]  }
 0x17f   :  { %2285 = vmatpush2.bf16.msra.mxu1 %v3040_v62  ;;  %2245 = vmatprep.subr.bf16.mxu0 %v3045_v63  ;;  %v3132_v62 = vld [vmem:[#allocation9 + $0x7cc] ss:$16 sps:$4 sm:$0xff]   ;;  %v3127_v63 = vld [vmem:[#allocation9 + $0x5c8] ss:$16 sps:$4 sm:$0xff]  }
 0x180   :  { %2286 = vmatprep.subr.bf16.mxu1 %v3048_v0  ;;  %v3130_v0 = vld [vmem:[#allocation9 + $0x7c8] ss:$16 sps:$4 sm:$0xff]  }
 0x182   :  { %2246 = vmatpush2.bf16.msra.mxu0 %v3043_v1  ;;  %v3135_v1 = vld [vmem:[#allocation9 + $0x5ac] ss:$16 sps:$4 sm:$0xff]  }
 0x183   :  { %2287 = vmatpush2.bf16.msra.mxu1 %v3046_v2  ;;  %2247 = vmatprep.subr.bf16.mxu0 %v3051_v3  ;;  %v3138_v2 = vld [vmem:[#allocation9 + $0x7ac] ss:$16 sps:$4 sm:$0xff]   ;;  %v3133_v3 = vld [vmem:[#allocation9 + $0x5a8] ss:$16 sps:$4 sm:$0xff]  }
 0x184   :  { %2288 = vmatprep.subr.bf16.mxu1 %v3054_v4  ;;  %v3136_v4 = vld [vmem:[#allocation9 + $0x7a8] ss:$16 sps:$4 sm:$0xff]  }
 0x186   :  { %2248 = vmatpush2.bf16.msra.mxu0 %v3049_v5  ;;  %v3141_v5 = vld [vmem:[#allocation9 + $0x58c] ss:$16 sps:$4 sm:$0xff]  }
 0x187   :  { %2289 = vmatpush2.bf16.msra.mxu1 %v3052_v9  ;;  %2249 = vmatprep.subr.bf16.mxu0 %v3057_v7  ;;  %v3144_v9 = vld [vmem:[#allocation9 + $0x78c] ss:$16 sps:$4 sm:$0xff]   ;;  %v3139_v7 = vld [vmem:[#allocation9 + $0x588] ss:$16 sps:$4 sm:$0xff]  }
 0x188   :  { %2290 = vmatprep.subr.bf16.mxu1 %v3060_v13  ;;  %v3142_v13 = vld [vmem:[#allocation9 + $0x788] ss:$16 sps:$4 sm:$0xff]  }
 0x18a   :  { %2250 = vmatpush2.bf16.msra.mxu0 %v3055_v14  ;;  %v3147_v14 = vld [vmem:[#allocation9 + $0x56c] ss:$16 sps:$4 sm:$0xff]  }
 0x18b   :  { %2291 = vmatpush2.bf16.msra.mxu1 %v3058_v54  ;;  %2251 = vmatprep.subr.bf16.mxu0 %v3063_v51  ;;  %v3150_v54 = vld [vmem:[#allocation9 + $0x76c] ss:$16 sps:$4 sm:$0xff]   ;;  %v3145_v51 = vld [vmem:[#allocation9 + $0x568] ss:$16 sps:$4 sm:$0xff]  }
 0x18c   :  { %2292 = vmatprep.subr.bf16.mxu1 %v3066_v18  ;;  %v3148_v18 = vld [vmem:[#allocation9 + $0x768] ss:$16 sps:$4 sm:$0xff]  }
 0x18e   :  { %2252 = vmatpush2.bf16.msra.mxu0 %v3061_v19  ;;  %v3153_v19 = vld [vmem:[#allocation9 + $0x54c] ss:$16 sps:$4 sm:$0xff]  }
 0x18f   :  { %2293 = vmatpush2.bf16.msra.mxu1 %v3064_v20  ;;  %2253 = vmatprep.subr.bf16.mxu0 %v3069_v21  ;;  %v3156_v20 = vld [vmem:[#allocation9 + $0x74c] ss:$16 sps:$4 sm:$0xff]   ;;  %v3151_v21 = vld [vmem:[#allocation9 + $0x548] ss:$16 sps:$4 sm:$0xff]  }
 0x190   :  { %2294 = vmatprep.subr.bf16.mxu1 %v3072_v22  ;;  %v3154_v22 = vld [vmem:[#allocation9 + $0x748] ss:$16 sps:$4 sm:$0xff]  }
 0x192   :  { %2254 = vmatpush2.bf16.msra.mxu0 %v3067_v23  ;;  %v3159_v23 = vld [vmem:[#allocation9 + $0x52c] ss:$16 sps:$4 sm:$0xff]  }
 0x193   :  { %2295 = vmatpush2.bf16.msra.mxu1 %v3070_v24  ;;  %2305 = vmatprep.subr.bf16.mxu0 %v3075_v25  ;;  %v3162_v24 = vld [vmem:[#allocation9 + $0x72c] ss:$16 sps:$4 sm:$0xff]   ;;  %v3157_v25 = vld [vmem:[#allocation9 + $0x528] ss:$16 sps:$4 sm:$0xff]  }
 0x194   :  { %2346 = vmatprep.subr.bf16.mxu1 %v3078_v26  ;;  %v3160_v26 = vld [vmem:[#allocation9 + $0x728] ss:$16 sps:$4 sm:$0xff]  }
 0x195   :  { %2256 = vmatmul.mubr.bf16.vlgmr.msra.gmra.mxu0 %v3378_v36  ;;  %v3088_v36 = vld [vmem:[#allocation9 + $0x6a8] ss:$16 sps:$4 sm:$0xff]  }
 0x196   :  { %2297 = vmatmul.mubr.bf16.vlgmr.msra.gmra.mxu1 %v3374_v32  ;;  %2306 = vmatpush1.bf16.msra.mxu0 %v3073_v27  ;;  %v3096_v32 = vld [vmem:[#allocation9 + $0x68c] ss:$16 sps:$4 sm:$0xff]  }
 0x197   :  { %2337 = vmatprep.mubr.bf16.mxu0 %v3394_v6  ;;  %2347 = vmatpush1.bf16.msra.mxu1 %v3076_v28  ;;  %v3094_v6 = vld [vmem:[#allocation9 + $0x688] ss:$16 sps:$4 sm:$0xff]   ;;  %v3165_v27 = vld [vmem:[#allocation9 + $0x50c] ss:$16 sps:$4 sm:$0xff]  }
 0x198   :  { %2378 = vmatprep.mubr.bf16.mxu1 %v3396_v15  ;;  %2307 = vmatprep.subr.bf16.mxu0 %v3081_v29  ;;  %v3097_v15 = vld [vmem:[#allocation9 + $0x468] ss:$16 sps:$4 sm:$0xff]   ;;  %v3168_v28 = vld [vmem:[#allocation9 + $0x70c] ss:$16 sps:$4 sm:$0xff]  }
 0x199   :  { %2348 = vmatprep.subr.bf16.mxu1 %v3084_v33  ;;  %v3163_v29 = vld [vmem:[#allocation9 + $0x508] ss:$16 sps:$4 sm:$0xff]  }
 0x19a   :  { %2308 = vmatpush1.bf16.msra.mxu0 %v3079_v30  ;;  %v3166_v33 = vld [vmem:[#allocation9 + $0x708] ss:$16 sps:$4 sm:$0xff]   ;;  %v757_v30 = vld [vmem:[%s3441_s4] sm:$0xf] }
 0x19b   :  { %2349 = vmatpush1.bf16.msra.mxu1 %v3082_v31  ;;  %2309 = vmatprep.subr.bf16.mxu0 %v3087_v37  ;;  %v762_v31 = vrot.slane %v757_v30, %v3353_v8  ;;  %v766_v37 = vrot.slane %v757_v30, %v3361_v11 }
 0x19c   :  { %2350 = vmatprep.subr.bf16.mxu1 %v3090_v34 }
 0x19e   :  { %2310 = vmatpush1.bf16.msra.mxu0 %v3085_v35 }
 0x19f   :  { %2351 = vmatpush1.bf16.msra.mxu1 %v3088_v36  ;;  %2311 = vmatprep.subr.bf16.mxu0 %v3093_v38 }
 0x1a0   :  { %2352 = vmatprep.subr.bf16.mxu1 %v3096_v32 }
 0x1a2   :  { %2312 = vmatpush1.bf16.msra.mxu0 %v3091_v39 }
 0x1a3   :  { %2353 = vmatpush1.bf16.msra.mxu1 %v3094_v6  ;;  %2313 = vmatprep.subr.bf16.mxu0 %v3099_v40 }
 0x1a4   :  { %2354 = vmatprep.subr.bf16.mxu1 %v3102_v41 }
 0x1a6   :  { %2314 = vmatpush1.bf16.msra.mxu0 %v3097_v15 }
 0x1a7   :  { %2355 = vmatpush1.bf16.msra.mxu1 %v3100_v42  ;;  %2315 = vmatprep.subr.bf16.mxu0 %v3105_v43 }
 0x1a8   :  { %2356 = vmatprep.subr.bf16.mxu1 %v3108_v44 }
 0x1aa   :  { %2316 = vmatpush1.bf16.msra.mxu0 %v3103_v45 }
 0x1ab   :  { %2357 = vmatpush1.bf16.msra.mxu1 %v3106_v46  ;;  %2317 = vmatprep.subr.bf16.mxu0 %v3111_v47 }
 0x1ac   :  { %2358 = vmatprep.subr.bf16.mxu1 %v3114_v48 }
 0x1ae   :  { %2318 = vmatpush1.bf16.msra.mxu0 %v3109_v49 }
 0x1af   :  { %2359 = vmatpush1.bf16.msra.mxu1 %v3112_v50  ;;  %2319 = vmatprep.subr.bf16.mxu0 %v3117_v52 }
 0x1b0   :  { %2360 = vmatprep.subr.bf16.mxu1 %v3120_v53 }
 0x1b2   :  { %2320 = vmatpush1.bf16.msra.mxu0 %v3115_v55 }
 0x1b3   :  { %2361 = vmatpush1.bf16.msra.mxu1 %v3118_v56  ;;  %2321 = vmatprep.subr.bf16.mxu0 %v3123_v57 }
 0x1b4   :  { %2362 = vmatprep.subr.bf16.mxu1 %v3126_v58 }
 0x1b6   :  { %2322 = vmatpush2.bf16.msra.mxu0 %v3121_v59 }
 0x1b7   :  { %2363 = vmatpush2.bf16.msra.mxu1 %v3124_v60  ;;  %2323 = vmatprep.subr.bf16.mxu0 %v3129_v61 }
 0x1b8   :  { %2364 = vmatprep.subr.bf16.mxu1 %v3132_v62 }
 0x1ba   :  { %2324 = vmatpush2.bf16.msra.mxu0 %v3127_v63 }
 0x1bb   :  { %2365 = vmatpush2.bf16.msra.mxu1 %v3130_v0  ;;  %2325 = vmatprep.subr.bf16.mxu0 %v3135_v1 }
 0x1bc   :  { %2366 = vmatprep.subr.bf16.mxu1 %v3138_v2 }
 0x1be   :  { %2326 = vmatpush2.bf16.msra.mxu0 %v3133_v3 }
 0x1bf   :  { %2367 = vmatpush2.bf16.msra.mxu1 %v3136_v4  ;;  %2327 = vmatprep.subr.bf16.mxu0 %v3141_v5 }
 0x1c0   :  { %2368 = vmatprep.subr.bf16.mxu1 %v3144_v9 }
 0x1c2   :  { %2328 = vmatpush2.bf16.msra.mxu0 %v3139_v7 }
 0x1c3   :  { %2369 = vmatpush2.bf16.msra.mxu1 %v3142_v13  ;;  %2329 = vmatprep.subr.bf16.mxu0 %v3147_v14  ;;  %v774_v13 = vrot.slane %v757_v30, %v3364_v12 }
 0x1c4   :  { %2370 = vmatprep.subr.bf16.mxu1 %v3150_v54 }
 0x1c6   :  { %2330 = vmatpush2.bf16.msra.mxu0 %v3145_v51 }
 0x1c7   :  { %2371 = vmatpush2.bf16.msra.mxu1 %v3148_v18  ;;  %2331 = vmatprep.subr.bf16.mxu0 %v3153_v19 }
 0x1c8   :  { %2372 = vmatprep.subr.bf16.mxu1 %v3156_v20 }
 0x1ca   :  { %2332 = vmatpush2.bf16.msra.mxu0 %v3151_v21 }
 0x1cb   :  { %2373 = vmatpush2.bf16.msra.mxu1 %v3154_v22  ;;  %2333 = vmatprep.subr.bf16.mxu0 %v3159_v23 }
 0x1cc   :  { %2374 = vmatprep.subr.bf16.mxu1 %v3162_v24 }
 0x1ce   :  { %2334 = vmatpush2.bf16.msra.mxu0 %v3157_v25 }
 0x1cf   :  { %2375 = vmatpush2.bf16.msra.mxu1 %v3160_v26  ;;  %2335 = vmatprep.subr.bf16.mxu0 %v3165_v27 }
 0x1d0   :  { %2376 = vmatprep.subr.bf16.mxu1 %v3168_v28 }
 0x1d2   :  { %2336 = vmatpush2.bf16.msra.mxu0 %v3163_v29 }
 0x1d3   :  { %2377 = vmatpush2.bf16.msra.mxu1 %v3166_v33 }
 0x1d5   :  { %2338 = vmatmul.mubr.bf16.vlgmr.msra.gmra.mxu0 %v3408_v17  ;;  %v2093_v34 = vpop.f32.mrf.mxu0  ;;  %v2134_v36 = vpop.f32.mrf.mxu1  ;;  %v2391_v17 = vld [vmem:[%s3442_s5] sm:$0xf]  ;;  %s3286_s5 = smov [#allocation11]  }
 0x1d6   :  { %2379 = vmatmul.mubr.bf16.vlgmr.msra.gmra.mxu1 %v3406_v16  ;;  %v2094_v35 = vadd.f32 %v2093_v34, %v762_v31  ;;  %v2396_v53 = vrot.slane %v2391_v17, %v3353_v8  ;;  %v2400_v56 = vrot.slane %v2391_v17, %v3361_v11  ;;  %v770_v8 = vrot.slane %v757_v30, %v3358_v10  ;;  %s2470_s25 = sshll.u32 %s3286_s5, 4  ;;  %s2471_s25 = int_to_ptr.vmem [resolvable:$true] %s2470_s25 }
 0x1d7   :  { %v2095_v38 = vpop.f32.mrf.mxu0  ;;  %v2136_v6 = vpop.f32.mrf.mxu1  ;;  %v2404_v23 = vrot.slane %v2391_v17, %v3358_v10  ;;  %v2408_v33 = vrot.slane %v2391_v17, %v3364_v12  ;;  %s3249_s26 = scalar_lea.vmem %s2471_s25, 16  ;;  %s3253_s27 = scalar_lea.vmem %s2471_s25, 32 }
 0x1d8   :  { %v2135_v32 = vadd.f32 %v2134_v36, %v2094_v35  ;;  %v2096_v39 = vadd.f32 %v2095_v38, %v766_v37  ;;  %p3250_p6 = scmp.ne.s32.totalorder %s2471_s25, %s3249_s26  ;;  %p3254_p7 = scmp.lt.s32.totalorder %s2471_s25, %s2471_s25 }
 0x1d9   :  { %v2097_v40 = vpop.f32.mrf.mxu0  ;;  %v2138_v15 = vpop.f32.mrf.mxu1  ;;  %p3255_p8 = scmp.lt.s32.totalorder %s3253_s27, %s3249_s26 }
 0x1da   :  { %v2137_v41 = vadd.f32 %v2136_v6, %v2096_v39 }
 0x1db   :  { %v2098_v42 = vpop.f32.mrf.mxu0  ;;  %v2139_v43 = vpop.f32.mrf.mxu1  ;;  %p3256_p9 = por %p3255_p8, %p3254_p7 }
 0x1dd   :  { %p3257_p10 = pnand %p3256_p9, %p3250_p6 }
 0x215   :  { %v2175_v44 = vpop.f32.mrf.mxu0  ;;  %v2216_v46 = vpop.f32.mrf.mxu1 }
 0x216   :  { %v2176_v45 = vadd.f32 %v2175_v44, %v2135_v32  ;;  %v2773_v32 = vld [vmem:[#allocation2] ss:$0 sm:$0xff] }
 0x217   :  { %v2177_v47 = vpop.f32.mrf.mxu0  ;;  %v2218_v49 = vpop.f32.mrf.mxu1 }
 0x218   :  { %v2217_v16 = vadd.f32 %v2216_v46, %v2176_v45  ;;  %v2178_v48 = vadd.f32 %v2177_v47, %v2137_v41 }
 0x219   :  { %v2179_v50 = vpop.f32.mrf.mxu0  ;;  %v2220_v57 = vpop.f32.mrf.mxu1 }
 0x21a   :  { %v2387_v52 = vmax.f32 %v2217_v16, 0.0  ;;  %v2219_v55 = vadd.f32 %v2218_v49, %v2178_v48 }
 0x21b   :  { %v2180_v58 = vpop.f32.mrf.mxu0  ;;  %v2221_v60 = vpop.f32.mrf.mxu1 }
 0x21c   :  { %v2388_v59 = vmax.f32 %v2219_v55, 0.0  ;;  %v2413_v61 = vmul.f32 %v2396_v53, %v2387_v52 }
 0x21e   :  { %v2414_v62 = vmul.f32 %v2400_v56, %v2388_v59 }
 0x220   :  { %v2417_v63 = vadd.f32 %v2414_v62, %v2413_v61 }
 0x255   :  { %v2257_v0 = vpop.f32.mrf.mxu0 }
 0x256   :  { %v2298_v1 = vpop.f32.mrf.mxu1  ;;  %v2258_v11 = vadd.f32 %v2257_v0, %v770_v8 }
 0x257   :  { %v2259_v2 = vpop.f32.mrf.mxu0 }
 0x258   :  { %v2300_v3 = vpop.f32.mrf.mxu1  ;;  %v2260_v14 = vadd.f32 %v2259_v2, %v774_v13  ;;  %v2299_v54 = vadd.f32 %v2298_v1, %v2258_v11 }
 0x259   :  { %v2261_v4 = vpop.f32.mrf.mxu0 }
 0x25a   :  { %v2302_v5 = vpop.f32.mrf.mxu1  ;;  %v2301_v18 = vadd.f32 %v2300_v3, %v2260_v14 }
 0x25b   :  { %v2262_v9 = vpop.f32.mrf.mxu0 }
 0x25c   :  { %v2303_v7 = vpop.f32.mrf.mxu1 }
 0x295   :  { %v2339_v51 = vpop.f32.mrf.mxu0 }
 0x296   :  { %v2340_v19 = vadd.f32 %v2339_v51, %v2299_v54  ;;  %v2380_v20 = vpop.f32.mrf.mxu1 }
 0x297   :  { %v2341_v21 = vpop.f32.mrf.mxu0 }
 0x298   :  { %v2381_v22 = vadd.f32 %v2380_v20, %v2340_v19  ;;  %v2342_v24 = vadd.f32 %v2341_v21, %v2301_v18  ;;  %v2382_v25 = vpop.f32.mrf.mxu1 }
 0x299   :  { %v2343_v26 = vpop.f32.mrf.mxu0 }
 0x29a   :  { %v2389_v27 = vmax.f32 %v2381_v22, 0.0  ;;  %v2383_v28 = vadd.f32 %v2382_v25, %v2342_v24  ;;  %v2384_v29 = vpop.f32.mrf.mxu1 }
 0x29b   :  { %v2344_v30 = vpop.f32.mrf.mxu0 }
 0x29c   :  { %v2415_v31 = vmul.f32 %v2404_v23, %v2389_v27  ;;  %v2390_v37 = vmax.f32 %v2383_v28, 0.0  ;;  %v2385_v34 = vpop.f32.mrf.mxu1 }
 0x29e   :  { %v2416_v35 = vmul.f32 %v2408_v33, %v2390_v37  ;;  %v2418_v36 = vadd.f32 %v2417_v63, %v2415_v31 }
 0x2a0   :  { %v2419_v38 = vadd.f32 %v2418_v36, %v2416_v35 }
 0x2a2   :  { %2420 = vadd.xlane.f32.xlu0 %v2419_v38 }
 0x32b   :  { %v2421_v39 = vpop.xlane.xlu0 %2420 }
 0x32c   :  { %v2429_v6 = vadd.f32 %v2773_v32, %v2421_v39 }
 0x32e   :  { %2430 = vxpose.xlu0.b32.start.end [1/1] (short) (narrow) %v2429_v6, 8 }
 0x3aa   :  { %v2446_v10 = vpop.trf.xlu0 }
 0x3ab   :  { %2463 = vst.msk [vmem:[#allocation11] sm:$0x1] %vm2462_vm1, %v2446_v10 }
 0x3ac   :  { %3260 = shalt.err (!%p3257_p10)
}
 0x3ad   :  { %2473 = dma.vmem_to_hbm [thread:$0]  %s2471_s25, 16, %s3444_s7, [#allocation5]  }
 0x3ae   :  { %3275 = dma.done.wait [#allocation5], 16  }
 0x3af   :  { %3276 = vsyncadd [#allocation5], 4294967280 }
 0x3b0   :  { %2477 = vsyncpa [#allocation4], 1 }
 0x3b1   :  { %2478 = vsyncpa [#allocation7], 1 }
 0x3b2   :  { %2479 = vsyncpa [#allocation10], 1 }
 0x3b3   :  { %2480 = vsyncpa [#allocation5], 1 }

</bundles_post_ra>
